<compile_context>
chip_gen: v5e
topology: v5e:2x2
jax: 0.10.0
libtpu: 0.0.40
codegen_flags: <defaults>
</compile_context>

<pallas_src>
import math

import jax
import jax.numpy as jnp
from jax.experimental import pallas as pl
from jax.experimental.pallas import tpu as pltpu  # noqa: F401  (TPU backend)

# ---- small-but-consistent sizes -------------------------------------------
B = 2            # batch
N_POINTS = 128   # points per cloud (real SMPL has 6890; small here)
FEAT = 512       # PointNetEncoder feature width (module default)
LATENT = 32      # VPoser latent size
V_SYNTH = 128    # synthetic SMPL vertex count -> V_SYNTH*3 = 384 (lane-dense)
HEAD_W = 128     # packed pose|beta head width (pose 0:63, beta 63:73, pad)
LOG_EPS = math.log(1e-8)


# ---------------------------------------------------------------------------
# Single fused kernel: PointNetEncoder -> FC heads -> VPoser encode/rsample/
# decode -> SMPL shape (+ synthetic pose) blendshapes.  One invocation, whole
# arrays resident in VMEM (~1.5 MB total working set).
# ---------------------------------------------------------------------------
def _vae_pointnet_kernel(x_ref, w1_ref, b1_ref, w2_ref, b2_ref, w3_ref, b3_ref,
                         whead_ref, bhead_ref, wz_ref, bz_ref, wd_ref, bd_ref,
                         sdirs_ref, pdirs_ref, vtmpl_ref, eps_ref,
                         head_ref, stat_ref, verts_ref):
    # ---- PointNetEncoder: per-point MLP on flattened (B*N, C) rows ---------
    x = x_ref[...]                                     # (B*N, 3)
    w1 = w1_ref[...]                                   # (3, 64)
    # K=3 layer on the VPU: 3 broadcast multiply-adds instead of a padded MXU push.
    h = (x[:, 0:1] * w1[0:1, :] +
         x[:, 1:2] * w1[1:2, :] +
         x[:, 2:3] * w1[2:3, :] + b1_ref[...])
    h = jnp.maximum(h, 0.0)                            # (B*N, 64)
    h = jnp.maximum(jnp.dot(h, w2_ref[...],
                            preferred_element_type=jnp.float32)
                    + b2_ref[...], 0.0)                # (B*N, 128)
    h = jnp.maximum(jnp.dot(h, w3_ref[...],
                            preferred_element_type=jnp.float32)
                    + b3_ref[...], 0.0)                # (B*N, FEAT)

    # torch.max(x, 2).values  -> per-batch max over points
    g = h.reshape(B, N_POINTS, FEAT).max(axis=1)       # (B, FEAT)

    # ---- pose_fc | beta_fc fused into one lane-dense matmul ----------------
    # lanes 0:63 = pose_hat, 63:73 = beta_hat, 73:128 = exact zeros
    head = (jnp.dot(g, whead_ref[...], preferred_element_type=jnp.float32)
            + bhead_ref[...])                          # (B, HEAD_W)
    head_ref[...] = head

    # ---- VPoser encode (synthetic): loc | logscale in one matmul -----------
    # wz rows 63:128 are zero, so feeding the packed head slab is exact.
    zz = (jnp.dot(head, wz_ref[...], preferred_element_type=jnp.float32)
          + bz_ref[...])                               # (B, 2*LATENT)
    loc = zz[:, :LATENT]
    raw = zz[:, LATENT:]                               # log(sigma^2)
    scale = jnp.exp(0.5 * raw)

    # logvar = log(scale^2 + 1e-8) = log(exp(raw) + 1e-8), overflow-safe form.
    m = jnp.maximum(raw, LOG_EPS)
    logvar = m + jnp.log(jnp.exp(raw - m) + jnp.exp(LOG_EPS - m))
    stat_ref[...] = jnp.concatenate(
        [loc, logvar, jnp.zeros((B, HEAD_W - 2 * LATENT), jnp.float32)],
        axis=-1)                                       # (B, HEAD_W) lane-dense

    # ---- rsample + VPoser decode (synthetic) -------------------------------
    z = loc + scale * eps_ref[...]                     # (B, LATENT)
    pose_dec = (jnp.dot(z, wd_ref[...], preferred_element_type=jnp.float32)
                + bd_ref[...])                         # (B, 63)
    # pose69 = cat([pose_dec, zeros(B,6)]); the zero tail contributes nothing
    # to the (linearized) pose blendshapes, so pose_dec is used directly.

    # ---- SMPL approximation: template + shape + synthetic pose blendshapes -
    # sdirs_ref rows 63:73 hold shapedirs (acts on the beta lanes of `head`).
    verts_ref[...] = (vtmpl_ref[...]
                      + jnp.dot(head, sdirs_ref[...],
                                preferred_element_type=jnp.float32)
                      + jnp.dot(pose_dec, pdirs_ref[...],
                                preferred_element_type=jnp.float32))


# ---------------------------------------------------------------------------
# Wrapper: lane-dense / K-padded weight packing (layout plumbing) + slicing
# the packed output slabs back to the module's natural shapes.
# ---------------------------------------------------------------------------
def _pack_params(enc_params, head_params):
    (w1, b1, w2, b2, w3, b3, wp, bp, wb, bb) = enc_params
    (wmu, bmu, wls, bls, wd, bd, sdirs, pdirs, vtmpl) = head_params

    # pose_fc | beta_fc -> one (FEAT, 128) matmul, lane-dense output slab.
    whead = jnp.zeros((FEAT, HEAD_W), jnp.float32)
    whead = whead.at[:, :63].set(wp).at[:, 63:73].set(wb)
    bhead = jnp.zeros((1, HEAD_W), jnp.float32)
    bhead = bhead.at[:, :63].set(bp).at[:, 63:73].set(bb)

    # VPoser-encode mu | logscale fused; rows padded to 128 so the packed head
    # slab can be used directly (beta / zero lanes hit zero rows -> exact).
    wz = jnp.zeros((HEAD_W, 2 * LATENT), jnp.float32)
    wz = wz.at[:63, :LATENT].set(wmu).at[:63, LATENT:].set(wls)
    bz = jnp.concatenate([bmu, bls], axis=1)           # (1, 2*LATENT)

    # shape blendshapes lifted onto the packed head slab (rows 63:73 = betas).
    sdirs_pad = jnp.zeros((HEAD_W, V_SYNTH * 3), jnp.float32)
    sdirs_pad = sdirs_pad.at[63:73, :].set(sdirs)

    return (w1, b1, w2, b2, w3, b3, whead, bhead, wz, bz, wd, bd,
            sdirs_pad, pdirs, vtmpl)


def vae_pointnet_forward(verts, enc_params, head_params, eps):
    packed = _pack_params(enc_params, head_params)
    x_flat = verts.reshape(B * N_POINTS, 3)            # channels-last rows

    head, stat, verts_out = pl.pallas_call(
        _vae_pointnet_kernel,
        out_shape=(
            jax.ShapeDtypeStruct((B, HEAD_W), jnp.float32),       # pose|beta
            jax.ShapeDtypeStruct((B, HEAD_W), jnp.float32),       # loc|logvar
            jax.ShapeDtypeStruct((B, V_SYNTH * 3), jnp.float32),  # vertices
        ),
    )(x_flat, *packed, eps)

    pose_hat = head[:, :63]
    beta_hat = head[:, 63:73]
    loc = stat[:, :LATENT]
    logvar = stat[:, LATENT:2 * LATENT]
    # (verts_out, dist.loc, log(dist.scale**2 + 1e-8), beta_hat, pose_hat)
    return verts_out, loc, logvar, beta_hat, pose_hat


# ---------------------------------------------------------------------------
# Parameter init (natural / module-shaped; packing happens in the wrapper).
# ---------------------------------------------------------------------------
def _init_params(key):
    ks = jax.random.split(key, 12)

    def lin(k, fan_in, fan_out):
        w = jax.random.normal(k, (fan_in, fan_out), jnp.float32) * 0.02
        b = jnp.full((1, fan_out), 0.01, jnp.float32)
        return w, b

    # PointNetEncoder: Conv1d(3,64,1), Conv1d(64,128,1), Conv1d(128,FEAT,1),
    # pose_fc (FEAT->63), beta_fc (FEAT->10)
    w1, b1 = lin(ks[0], 3, 64)
    w2, b2 = lin(ks[1], 64, 128)
    w3, b3 = lin(ks[2], 128, FEAT)
    wp, bp = lin(ks[3], FEAT, 63)
    wb, bb = lin(ks[4], FEAT, 10)
    enc_params = (w1, b1, w2, b2, w3, b3, wp, bp, wb, bb)

    # synthetic VPoser encode/decode
    wmu, bmu = lin(ks[5], 63, LATENT)
    wls, bls = lin(ks[6], 63, LATENT)
    wd, bd = lin(ks[7], LATENT, 63)

    # synthetic SMPL shape/pose blendshapes + template (flattened to V*3)
    sdirs = jax.random.normal(ks[8], (10, V_SYNTH * 3), jnp.float32) * 0.01
    pdirs = jax.random.normal(ks[9], (63, V_SYNTH * 3), jnp.float32) * 0.01
    vtmpl = jax.random.normal(ks[10], (1, V_SYNTH * 3), jnp.float32) * 0.1
    head_params = (wmu, bmu, wls, bls, wd, bd, sdirs, pdirs, vtmpl)
    return enc_params, head_params


if __name__ == "__main__":
    root = jax.random.PRNGKey(0)
    k_param, k_x, k_eps = jax.random.split(root, 3)

    enc_params, head_params = _init_params(k_param)
    verts = jax.random.normal(k_x, (B, N_POINTS, 3), jnp.float32)
    eps = jax.random.normal(k_eps, (B, LATENT), jnp.float32)   # dist.rsample noise

    outs = jax.jit(vae_pointnet_forward)(verts, enc_params, head_params, eps)
    outs = jax.block_until_ready(outs)

    verts_out, loc, logvar, beta_hat, pose_hat = outs
    assert verts_out.shape == (B, V_SYNTH * 3)
    assert loc.shape == (B, LATENT) and logvar.shape == (B, LATENT)
    assert beta_hat.shape == (B, 10) and pose_hat.shape == (B, 63)
    assert bool(jnp.all(jnp.isfinite(verts_out)))
    assert bool(jnp.all(jnp.isfinite(logvar)))
    print("KERNEL_OK")
</pallas_src>

<mosaic_0001>
module attributes {stable_mosaic.version = 11 : i64} {
  func.func @_vae_pointnet_kernel(%arg0: memref<256x3xf32, #tpu.memory_space<vmem>>, %arg1: memref<3x64xf32, #tpu.memory_space<vmem>>, %arg2: memref<1x64xf32, #tpu.memory_space<vmem>>, %arg3: memref<64x128xf32, #tpu.memory_space<vmem>>, %arg4: memref<1x128xf32, #tpu.memory_space<vmem>>, %arg5: memref<128x512xf32, #tpu.memory_space<vmem>>, %arg6: memref<1x512xf32, #tpu.memory_space<vmem>>, %arg7: memref<512x128xf32, #tpu.memory_space<vmem>>, %arg8: memref<1x128xf32, #tpu.memory_space<vmem>>, %arg9: memref<128x64xf32, #tpu.memory_space<vmem>>, %arg10: memref<1x64xf32, #tpu.memory_space<vmem>>, %arg11: memref<32x63xf32, #tpu.memory_space<vmem>>, %arg12: memref<1x63xf32, #tpu.memory_space<vmem>>, %arg13: memref<128x384xf32, #tpu.memory_space<vmem>>, %arg14: memref<63x384xf32, #tpu.memory_space<vmem>>, %arg15: memref<1x384xf32, #tpu.memory_space<vmem>>, %arg16: memref<2x32xf32, #tpu.memory_space<vmem>>, %arg17: memref<2x128xf32, #tpu.memory_space<vmem>>, %arg18: memref<2x128xf32, #tpu.memory_space<vmem>>, %arg19: memref<2x384xf32, #tpu.memory_space<vmem>>) attributes {dimension_semantics = [], scalar_prefetch = 0 : i64, scratch_operands = 0 : i64, tpu.core_type = #tpu.core_type<tc>} {
    %c0 = arith.constant 0 : index
    %c0_0 = arith.constant 0 : index
    %0 = vector.load %arg0[%c0, %c0_0] : memref<256x3xf32, #tpu.memory_space<vmem>>, vector<256x3xf32>
    %c0_1 = arith.constant 0 : index
    %c0_2 = arith.constant 0 : index
    %1 = vector.load %arg1[%c0_1, %c0_2] : memref<3x64xf32, #tpu.memory_space<vmem>>, vector<3x64xf32>
    %2 = vector.extract_strided_slice %0 {offsets = [0, 0], sizes = [256, 1], strides = [1, 1]} : vector<256x3xf32> to vector<256x1xf32>
    %3 = vector.extract_strided_slice %1 {offsets = [0, 0], sizes = [1, 64], strides = [1, 1]} : vector<3x64xf32> to vector<1x64xf32>
    %4 = vector.broadcast %2 : vector<256x1xf32> to vector<256x64xf32>
    %5 = vector.broadcast %3 : vector<1x64xf32> to vector<256x64xf32>
    %6 = arith.mulf %4, %5 : vector<256x64xf32>
    %7 = vector.extract_strided_slice %0 {offsets = [0, 1], sizes = [256, 1], strides = [1, 1]} : vector<256x3xf32> to vector<256x1xf32>
    %8 = vector.extract_strided_slice %1 {offsets = [1, 0], sizes = [1, 64], strides = [1, 1]} : vector<3x64xf32> to vector<1x64xf32>
    %9 = vector.broadcast %7 : vector<256x1xf32> to vector<256x64xf32>
    %10 = vector.broadcast %8 : vector<1x64xf32> to vector<256x64xf32>
    %11 = arith.mulf %9, %10 : vector<256x64xf32>
    %12 = arith.addf %6, %11 : vector<256x64xf32>
    %13 = vector.extract_strided_slice %0 {offsets = [0, 2], sizes = [256, 1], strides = [1, 1]} : vector<256x3xf32> to vector<256x1xf32>
    %14 = vector.extract_strided_slice %1 {offsets = [2, 0], sizes = [1, 64], strides = [1, 1]} : vector<3x64xf32> to vector<1x64xf32>
    %15 = vector.broadcast %13 : vector<256x1xf32> to vector<256x64xf32>
    %16 = vector.broadcast %14 : vector<1x64xf32> to vector<256x64xf32>
    %17 = arith.mulf %15, %16 : vector<256x64xf32>
    %18 = arith.addf %12, %17 : vector<256x64xf32>
    %c0_3 = arith.constant 0 : index
    %c0_4 = arith.constant 0 : index
    %19 = vector.load %arg2[%c0_3, %c0_4] : memref<1x64xf32, #tpu.memory_space<vmem>>, vector<1x64xf32>
    %20 = vector.broadcast %19 : vector<1x64xf32> to vector<256x64xf32>
    %21 = arith.addf %18, %20 : vector<256x64xf32>
    %cst = arith.constant 0.000000e+00 : f32
    %22 = vector.broadcast %cst : f32 to vector<256x64xf32>
    %23 = arith.maximumf %21, %22 : vector<256x64xf32>
    %c0_5 = arith.constant 0 : index
    %c0_6 = arith.constant 0 : index
    %24 = vector.load %arg3[%c0_5, %c0_6] : memref<64x128xf32, #tpu.memory_space<vmem>>, vector<64x128xf32>
    %cst_7 = arith.constant dense<0.000000e+00> : vector<256x128xf32>
    %25 = tpu.matmul %23, %24, %cst_7 {dimension_numbers = #tpu.dot_dimension_numbers<[1], [0], [0], [1], [0, 0, 1, 1], [], []>} : vector<256x64xf32>, vector<64x128xf32>, vector<256x128xf32> -> vector<256x128xf32>
    %c0_8 = arith.constant 0 : index
    %c0_9 = arith.constant 0 : index
    %26 = vector.load %arg4[%c0_8, %c0_9] : memref<1x128xf32, #tpu.memory_space<vmem>>, vector<1x128xf32>
    %27 = vector.broadcast %26 : vector<1x128xf32> to vector<256x128xf32>
    %28 = arith.addf %25, %27 : vector<256x128xf32>
    %cst_10 = arith.constant 0.000000e+00 : f32
    %29 = vector.broadcast %cst_10 : f32 to vector<256x128xf32>
    %30 = arith.maximumf %28, %29 : vector<256x128xf32>
    %c0_11 = arith.constant 0 : index
    %c0_12 = arith.constant 0 : index
    %31 = vector.load %arg5[%c0_11, %c0_12] : memref<128x512xf32, #tpu.memory_space<vmem>>, vector<128x512xf32>
    %cst_13 = arith.constant dense<0.000000e+00> : vector<256x512xf32>
    %32 = tpu.matmul %30, %31, %cst_13 {dimension_numbers = #tpu.dot_dimension_numbers<[1], [0], [0], [1], [0, 0, 1, 1], [], []>} : vector<256x128xf32>, vector<128x512xf32>, vector<256x512xf32> -> vector<256x512xf32>
    %c0_14 = arith.constant 0 : index
    %c0_15 = arith.constant 0 : index
    %33 = vector.load %arg6[%c0_14, %c0_15] : memref<1x512xf32, #tpu.memory_space<vmem>>, vector<1x512xf32>
    %34 = vector.broadcast %33 : vector<1x512xf32> to vector<256x512xf32>
    %35 = arith.addf %32, %34 : vector<256x512xf32>
    %cst_16 = arith.constant 0.000000e+00 : f32
    %36 = vector.broadcast %cst_16 : f32 to vector<256x512xf32>
    %37 = arith.maximumf %35, %36 : vector<256x512xf32>
    %38 = vector.shape_cast %37 : vector<256x512xf32> to vector<2x128x512xf32>
    %cst_17 = arith.constant dense<0xFF800000> : vector<2x512xf32>
    %39 = vector.multi_reduction <maximumf>, %38, %cst_17 [1] : vector<2x128x512xf32> to vector<2x512xf32>
    %c0_18 = arith.constant 0 : index
    %c0_19 = arith.constant 0 : index
    %40 = vector.load %arg7[%c0_18, %c0_19] : memref<512x128xf32, #tpu.memory_space<vmem>>, vector<512x128xf32>
    %cst_20 = arith.constant dense<0.000000e+00> : vector<2x128xf32>
    %41 = tpu.matmul %39, %40, %cst_20 {dimension_numbers = #tpu.dot_dimension_numbers<[1], [0], [0], [1], [0, 0, 1, 1], [], []>} : vector<2x512xf32>, vector<512x128xf32>, vector<2x128xf32> -> vector<2x128xf32>
    %c0_21 = arith.constant 0 : index
    %c0_22 = arith.constant 0 : index
    %42 = vector.load %arg8[%c0_21, %c0_22] : memref<1x128xf32, #tpu.memory_space<vmem>>, vector<1x128xf32>
    %43 = vector.broadcast %42 : vector<1x128xf32> to vector<2x128xf32>
    %44 = arith.addf %41, %43 : vector<2x128xf32>
    %c0_23 = arith.constant 0 : index
    %c0_24 = arith.constant 0 : index
    %45 = vector.load %arg17[%c0_23, %c0_24] : memref<2x128xf32, #tpu.memory_space<vmem>>, vector<2x128xf32>
    tpu.vector_store %arg17[%c0_23, %c0_24], %44 {strides = array<i32>} : memref<2x128xf32, #tpu.memory_space<vmem>>, vector<2x128xf32>,
    %c0_25 = arith.constant 0 : index
    %c0_26 = arith.constant 0 : index
    %46 = vector.load %arg9[%c0_25, %c0_26] : memref<128x64xf32, #tpu.memory_space<vmem>>, vector<128x64xf32>
    %cst_27 = arith.constant dense<0.000000e+00> : vector<2x64xf32>
    %47 = tpu.matmul %44, %46, %cst_27 {dimension_numbers = #tpu.dot_dimension_numbers<[1], [0], [0], [1], [0, 0, 1, 1], [], []>} : vector<2x128xf32>, vector<128x64xf32>, vector<2x64xf32> -> vector<2x64xf32>
    %c0_28 = arith.constant 0 : index
    %c0_29 = arith.constant 0 : index
    %48 = vector.load %arg10[%c0_28, %c0_29] : memref<1x64xf32, #tpu.memory_space<vmem>>, vector<1x64xf32>
    %49 = vector.broadcast %48 : vector<1x64xf32> to vector<2x64xf32>
    %50 = arith.addf %47, %49 : vector<2x64xf32>
    %51 = vector.extract_strided_slice %50 {offsets = [0, 0], sizes = [2, 32], strides = [1, 1]} : vector<2x64xf32> to vector<2x32xf32>
    %52 = vector.extract_strided_slice %50 {offsets = [0, 32], sizes = [2, 32], strides = [1, 1]} : vector<2x64xf32> to vector<2x32xf32>
    %cst_30 = arith.constant 5.000000e-01 : f32
    %53 = vector.broadcast %cst_30 : f32 to vector<2x32xf32>
    %54 = arith.mulf %53, %52 : vector<2x32xf32>
    %55 = math.exp %54 : vector<2x32xf32>
    %cst_31 = arith.constant -18.420681 : f32
    %56 = vector.broadcast %cst_31 : f32 to vector<2x32xf32>
    %57 = arith.maximumf %52, %56 : vector<2x32xf32>
    %58 = arith.subf %52, %57 : vector<2x32xf32>
    %59 = math.exp %58 : vector<2x32xf32>
    %cst_32 = arith.constant -18.420681 : f32
    %60 = vector.broadcast %cst_32 : f32 to vector<2x32xf32>
    %61 = arith.subf %60, %57 : vector<2x32xf32>
    %62 = math.exp %61 : vector<2x32xf32>
    %63 = arith.addf %59, %62 : vector<2x32xf32>
    %64 = math.log %63 : vector<2x32xf32>
    %65 = arith.addf %57, %64 : vector<2x32xf32>
    %cst_33 = arith.constant 0.000000e+00 : f32
    %66 = vector.broadcast %cst_33 : f32 to vector<2x64xf32>
    %67 = tpu.concatenate %51, %65, %66 in 1 : vector<2x32xf32>, vector<2x32xf32>, vector<2x64xf32> -> vector<2x128xf32>
    %c0_34 = arith.constant 0 : index
    %c0_35 = arith.constant 0 : index
    %68 = vector.load %arg18[%c0_34, %c0_35] : memref<2x128xf32, #tpu.memory_space<vmem>>, vector<2x128xf32>
    tpu.vector_store %arg18[%c0_34, %c0_35], %67 {strides = array<i32>} : memref<2x128xf32, #tpu.memory_space<vmem>>, vector<2x128xf32>,
    %c0_36 = arith.constant 0 : index
    %c0_37 = arith.constant 0 : index
    %69 = vector.load %arg16[%c0_36, %c0_37] : memref<2x32xf32, #tpu.memory_space<vmem>>, vector<2x32xf32>
    %70 = arith.mulf %55, %69 : vector<2x32xf32>
    %71 = arith.addf %51, %70 : vector<2x32xf32>
    %c0_38 = arith.constant 0 : index
    %c0_39 = arith.constant 0 : index
    %72 = vector.load %arg11[%c0_38, %c0_39] : memref<32x63xf32, #tpu.memory_space<vmem>>, vector<32x63xf32>
    %cst_40 = arith.constant dense<0.000000e+00> : vector<2x63xf32>
    %73 = tpu.matmul %71, %72, %cst_40 {dimension_numbers = #tpu.dot_dimension_numbers<[1], [0], [0], [1], [0, 0, 1, 1], [], []>} : vector<2x32xf32>, vector<32x63xf32>, vector<2x63xf32> -> vector<2x63xf32>
    %c0_41 = arith.constant 0 : index
    %c0_42 = arith.constant 0 : index
    %74 = vector.load %arg12[%c0_41, %c0_42] : memref<1x63xf32, #tpu.memory_space<vmem>>, vector<1x63xf32>
    %75 = vector.broadcast %74 : vector<1x63xf32> to vector<2x63xf32>
    %76 = arith.addf %73, %75 : vector<2x63xf32>
    %c0_43 = arith.constant 0 : index
    %c0_44 = arith.constant 0 : index
    %77 = vector.load %arg15[%c0_43, %c0_44] : memref<1x384xf32, #tpu.memory_space<vmem>>, vector<1x384xf32>
    %c0_45 = arith.constant 0 : index
    %c0_46 = arith.constant 0 : index
    %78 = vector.load %arg13[%c0_45, %c0_46] : memref<128x384xf32, #tpu.memory_space<vmem>>, vector<128x384xf32>
    %cst_47 = arith.constant dense<0.000000e+00> : vector<2x384xf32>
    %79 = tpu.matmul %44, %78, %cst_47 {dimension_numbers = #tpu.dot_dimension_numbers<[1], [0], [0], [1], [0, 0, 1, 1], [], []>} : vector<2x128xf32>, vector<128x384xf32>, vector<2x384xf32> -> vector<2x384xf32>
    %80 = vector.broadcast %77 : vector<1x384xf32> to vector<2x384xf32>
    %81 = arith.addf %80, %79 : vector<2x384xf32>
    %c0_48 = arith.constant 0 : index
    %c0_49 = arith.constant 0 : index
    %82 = vector.load %arg14[%c0_48, %c0_49] : memref<63x384xf32, #tpu.memory_space<vmem>>, vector<63x384xf32>
    %cst_50 = arith.constant dense<0.000000e+00> : vector<2x384xf32>
    %83 = tpu.matmul %76, %82, %cst_50 {dimension_numbers = #tpu.dot_dimension_numbers<[1], [0], [0], [1], [0, 0, 1, 1], [], []>} : vector<2x63xf32>, vector<63x384xf32>, vector<2x384xf32> -> vector<2x384xf32>
    %84 = arith.addf %81, %83 : vector<2x384xf32>
    %c0_51 = arith.constant 0 : index
    %c0_52 = arith.constant 0 : index
    %85 = vector.load %arg19[%c0_51, %c0_52] : memref<2x384xf32, #tpu.memory_space<vmem>>, vector<2x384xf32>
    tpu.vector_store %arg19[%c0_51, %c0_52], %84 {strides = array<i32>} : memref<2x384xf32, #tpu.memory_space<vmem>>, vector<2x384xf32>,
    return
  }
}

</mosaic_0001>

<bundles_post_ra>
// kernel: vae_pointnet_forward.1
= control target key start
LH: loop header
LB: loop body
LE: loop exit
PB: predicated region body
PF: predicated region fallthrough
CT: control target
= control target key end

     0   :  { %s4256_s0 = inlined_call_operand.vmem [shape: f32[256,3], index: 0, kind: input, shape index: {}]   ;;  %s4257_s1 = inlined_call_operand.vmem [shape: f32[3,64], index: 1, kind: input, shape index: {}]   ;;  %s4258_s2 = inlined_call_operand.vmem [shape: f32[1,64], index: 2, kind: input, shape index: {}]   ;;  %s4259_s3 = inlined_call_operand.vmem [shape: f32[64,128], index: 3, kind: input, shape index: {}]   ;;  %s4260_s4 = inlined_call_operand.vmem [shape: f32[1,128], index: 4, kind: input, shape index: {}]   ;;  %s4261_s5 = inlined_call_operand.vmem [shape: f32[128,512], index: 5, kind: input, shape index: {}]   ;;  %s4262_s6 = inlined_call_operand.vmem [shape: f32[1,512], index: 6, kind: input, shape index: {}]   ;;  %s4263_s7 = inlined_call_operand.vmem [shape: f32[512,128], index: 7, kind: input, shape index: {}]   ;;  %s4264_s8 = inlined_call_operand.vmem [shape: f32[1,128], index: 8, kind: input, shape index: {}]   ;;  %s4265_s9 = inlined_call_operand.vmem [shape: f32[128,64], index: 9, kind: input, shape index: {}]   ;;  %s4266_s10 = inlined_call_operand.vmem [shape: f32[1,64], index: 10, kind: input, shape index: {}]   ;;  %s4267_s11 = inlined_call_operand.vmem [shape: f32[32,63], index: 11, kind: input, shape index: {}]   ;;  %s4268_s12 = inlined_call_operand.vmem [shape: f32[1,63], index: 12, kind: input, shape index: {}]   ;;  %s4269_s13 = inlined_call_operand.vmem [shape: f32[128,384], index: 13, kind: input, shape index: {}]   ;;  %s4270_s14 = inlined_call_operand.vmem [shape: f32[63,384], index: 14, kind: input, shape index: {}]   ;;  %s4271_s15 = inlined_call_operand.vmem [shape: f32[1,384], index: 15, kind: input, shape index: {}]   ;;  %s4272_s16 = inlined_call_operand.vmem [shape: f32[2,32], index: 16, kind: input, shape index: {}]   ;;  %s4273_s17 = inlined_call_operand.vmem [shape: f32[2,128], index: 17, kind: output, shape index: {0}]   ;;  %s4274_s18 = inlined_call_operand.vmem [shape: f32[2,128], index: 18, kind: output, shape index: {1}]   ;;  %s4275_s19 = inlined_call_operand.hbm [shape: f32[2,384], index: 19, kind: output, shape index: {2}]  }
   0x1   :  { %4279 = sst [smem:[#allocation5_spill]] %s4256_s0 }
   0x2   :  { %4280 = sst [smem:[#allocation6_spill]] %s4257_s1 }
   0x3   :  { %4281 = sst [smem:[#allocation7_spill]] %s4258_s2 }
   0x4   :  { %4282 = sst [smem:[#allocation8_spill]] %s4259_s3 }
   0x5   :  { %s4283_s20 = sld [smem:[#allocation5_spill]]  ;;  %v2506_v2 = vmov 2   ;;  %v2507_v3 = vmov 1   ;;  %v2508_v4 = vmov 0  }
   0x6   :  { %2408 = vset.pattern.permute.xlu1 %v2506_v2  ;;  %2410 = vset.pattern.permute.xlu2 %v2507_v3 }
   0x7   :  { %2406 = vset.pattern.permute.xlu0 %v2508_v4 }
   0xb   :  { %v61_v0 = vld [vmem:[%s4283_s20 + $0x8] sm:$0xff]  ;;  %v60_v1 = vld [vmem:[%s4283_s20] sm:$0xff] }
   0xc   :  { %291 = vperm.xlu2 %2410, %v61_v0   ;;  %480 = vperm.xlu1 %2408, %v60_v1  }
   0xd   :  { %95 = vperm.xlu0 %2406, %v60_v1  }
   0xe   :  { %25 = vsyncpa [#allocation3], 0  ;;  %v62_v5 = vld [vmem:[%s4283_s20 + $0x10] sm:$0xff]  ;;  %v64_v6 = vld [vmem:[%s4283_s20 + $0x20] sm:$0xff]  ;;  %s4284_s21 = sld [smem:[#allocation8_spill]]  ;;  %vm752_vm0 = vcmask 523264  }
   0xf   :  { %v63_v7 = vld [vmem:[%s4283_s20 + $0x18] sm:$0xff]  ;;  %v2637_v8 = vld [vmem:[%s4283_s20 + $0x48] sm:$0xff]  ;;  %v2652_v11 = vld [vmem:[%s4283_s20 + $0xb0] sm:$0xff]  ;;  %s4285_s30 = sld [smem:[#allocation6_spill]]  ;;  %vm1892_vm1 = vcmask 1041409   ;;  %s2509_s22 = smov 32  }
  0x10   :  { %v67_v9 = vld [vmem:[%s4283_s20 + $0x38] sm:$0xff]  ;;  %v65_v10 = vld [vmem:[%s4283_s20 + $0x28] sm:$0xff]  ;;  %v66_v13 = vld [vmem:[%s4283_s20 + $0x30] sm:$0xff]  ;;  %s4286_s24 = sld [smem:[#allocation7_spill]]  ;;  %s2510_s3 = smov 96   ;;  %vm2036_vm2 = vcmask 261120  }
  0x11   :  { %v2660_v12 = vld [vmem:[%s4283_s20 + $0x58] sm:$0xff]  ;;  %v2669_v14 = vld [vmem:[%s4283_s20 + $0xc8] sm:$0xff]  ;;  %v68_v15 = vld [vmem:[%s4283_s20 + $0x40] sm:$0xff]  ;;  %vm2229_vm3 = vcmask 1046528   ;;  %vm2225_vm4 = vcmask 515072   ;;  %vm2307_vm5 = vcmask 1041408  }
  0x12   :  { %v2681_v16 = vld [vmem:[%s4283_s20 + $0x50] sm:$0xff]  ;;  %v2695_v19 = vld [vmem:[%s4283_s20 + $0x68] sm:$0xff]  ;;  %v2736_v30 = vld [vmem:[%s4283_s20 + $0xf8] sm:$0xff]  ;;  %vm2309_vm6 = vcmask 1043456  }
  0x13   :  { %v81_v22 = vld [vmem:[%s4283_s20 + $0xa8] sm:$0xff]  ;;  %v2718_v25 = vld [vmem:[%s4283_s20 + $0xd0] sm:$0xff]  ;;  %v2745_v32 = vld [vmem:[%s4283_s20 + $0x80] sm:$0xff] }
  0x14   :  { %2411 = vset.pattern.permute.xlu2 %v2506_v2  ;;  %2409 = vset.pattern.permute.xlu1 %v2508_v4  ;;  %v747_v17 = vld [vmem:[%s4284_s21 + $0x38] sm:$0xff]  ;;  %v746_v20 = vld [vmem:[%s4284_s21 + $0x30] sm:$0xff]  ;;  %v745_v21 = vld [vmem:[%s4284_s21 + $0x28] sm:$0xff] }
  0x15   :  { %2407 = vset.pattern.permute.xlu0 %v2507_v3  ;;  %484 = vperm.xlu2 %2411, %v61_v0   ;;  %v744_v23 = vld [vmem:[%s4284_s21 + $0x20] sm:$0xff]  ;;  %v743_v24 = vld [vmem:[%s4284_s21 + $0x18] sm:$0xff]  ;;  %v742_v26 = vld [vmem:[%s4284_s21 + $0x10] sm:$0xff] }
  0x16   :  { %100 = vperm.xlu1 %2409, %v61_v0   ;;  %287 = vperm.xlu0 %2407, %v60_v1   ;;  %v741_v28 = vld [vmem:[%s4284_s21 + $0x8] sm:$0xff]  ;;  %v740_v29 = vld [vmem:[%s4284_s21] sm:$0xff]  ;;  %v83_v61 = vld [vmem:[%s4283_s20 + $0xb8] sm:$0xff] }
  0x17   :  { %857 = vmatpush.msra.mxu0 %v747_v17  ;;  %2377 = vmatpush.msra.mxu2 %v747_v17  ;;  %v92_v36 = vld [vmem:[%s4285_s30] sm:$0x7] }
  0x18   :  { %2378 = vmatpush.msra.mxu3 %v747_v17  ;;  %2376 = vmatpush.msra.mxu1 %v747_v17  ;;  %v2752_v37 = vperm.slane %v92_v36, 0  ;;  %v2759_v38 = vld [vmem:[%s4283_s20 + $0x60] sm:$0xff]  ;;  %v2761_v39 = vperm.slane %v92_v36, 1  ;;  %v2763_v40 = vperm.slane %v92_v36, 2 }
  0x19   :  { %858 = vmatpush.msra.mxu0 %v746_v20  ;;  %2380 = vmatpush.msra.mxu2 %v746_v20  ;;  %v2777_v50 = vld [vmem:[%s4286_s24] ss:$0 sm:$0xff] }
  0x1a   :  { %2381 = vmatpush.msra.mxu3 %v746_v20  ;;  %2379 = vmatpush.msra.mxu1 %v746_v20  ;;  %v2788_v59 = vld [vmem:[%s4283_s20 + $0xe0] sm:$0xff] }
  0x1b   :  { %859 = vmatpush.msra.mxu0 %v745_v21  ;;  %2383 = vmatpush.msra.mxu2 %v745_v21 }
  0x1c   :  { %2384 = vmatpush.msra.mxu3 %v745_v21  ;;  %2382 = vmatpush.msra.mxu1 %v745_v21 }
  0x1d   :  { %2412 = vset.pattern.permute.xlu2 %v2507_v3  ;;  %860 = vmatpush.msra.mxu0 %v744_v23 }
  0x1e   :  { %105 = vperm.xlu1 %2409, %v62_v5   ;;  %303 = vperm.xlu0 %2407, %v64_v6  }
  0x1f   :  { %295 = vperm.xlu2 %2412, %v62_v5   ;;  %861 = vmatpush.msra.mxu0 %v743_v24 }
  0x20   :  { %2386 = vmatpush.msra.mxu2 %v744_v23  ;;  %2387 = vmatpush.msra.mxu3 %v744_v23 }
  0x21   :  { %862 = vmatpush.msra.mxu0 %v742_v26  ;;  %2385 = vmatpush.msra.mxu1 %v744_v23 }
  0x22   :  { %2389 = vmatpush.msra.mxu2 %v743_v24  ;;  %2390 = vmatpush.msra.mxu3 %v743_v24 }
  0x23   :  { %863 = vmatpush.msra.mxu0 %v741_v28  ;;  %2388 = vmatpush.msra.mxu1 %v743_v24 }
  0x24   :  { %2392 = vmatpush.msra.mxu2 %v742_v26  ;;  %2393 = vmatpush.msra.mxu3 %v742_v26 }
  0x25   :  { %864 = vmatpush.msra.mxu0 %v740_v29  ;;  %2391 = vmatpush.msra.mxu1 %v742_v26 }
  0x26   :  { %110 = vperm.xlu1 %2409, %v63_v7   ;;  %323 = vperm.xlu0 %2407, %v2637_v8  }
  0x27   :  { %299 = vperm.xlu2 %2412, %v63_v7   ;;  %2395 = vmatpush.msra.mxu2 %v741_v28 }
  0x28   :  { %2396 = vmatpush.msra.mxu3 %v741_v28  ;;  %2394 = vmatpush.msra.mxu1 %v741_v28 }
  0x29   :  { %2398 = vmatpush.msra.mxu2 %v740_v29 }
  0x2a   :  { %2399 = vmatpush.msra.mxu3 %v740_v29  ;;  %2397 = vmatpush.msra.mxu1 %v740_v29 }
  0x2e   :  { %2413 = vset.pattern.permute.xlu1 %v2506_v2  ;;  %2421 = vset.pattern.permute.xlu0 %v2506_v2 }
  0x2f   :  { %2414 = vset.pattern.permute.xlu2 %v2508_v4  ;;  %492 = vperm.xlu1 %2413, %v63_v7  }
  0x30   :  { %488 = vperm.xlu0 %2421, %v62_v5   ;;  %115 = vperm.xlu2 %2414, %v64_v6  }
  0x37   :  { %496 = vperm.xlu1 %2413, %v64_v6  }
  0x38   :  { %508 = vperm.xlu0 %2421, %v67_v9   ;;  %120 = vperm.xlu2 %2414, %v65_v10  }
  0x3f   :  { %2415 = vset.pattern.permute.xlu1 %v2507_v3 }
  0x40   :  { %568 = vperm.xlu0 %2421, %v2652_v11   ;;  %2416 = vset.pattern.permute.xlu2 %v2506_v2 }
  0x41   :  { %307 = vperm.xlu1 %2415, %v65_v10   ;;  %500 = vperm.xlu2 %2416, %v65_v10  }
  0x48   :  { %524 = vperm.xlu0 %2421, %v2660_v12  }
  0x49   :  { %311 = vperm.xlu1 %2415, %v66_v13   ;;  %504 = vperm.xlu2 %2416, %v66_v13  }
  0x50   :  { %580 = vperm.xlu0 %2421, %v2669_v14  }
  0x51   :  { %2417 = vset.pattern.permute.xlu1 %v2508_v4  ;;  %2418 = vset.pattern.permute.xlu2 %v2507_v3 }
  0x52   :  { %130 = vperm.xlu1 %2417, %v67_v9   ;;  %315 = vperm.xlu2 %2418, %v67_v9  }
  0x58   :  { %2446 = vset.pattern.permute.xlu0 %v2508_v4 }
  0x59   :  { %125 = vperm.xlu0 %2446, %v66_v13  }
  0x5a   :  { %135 = vperm.xlu1 %2417, %v68_v15   ;;  %319 = vperm.xlu2 %2418, %v68_v15  }
  0x61   :  { %145 = vperm.xlu0 %2446, %v2681_v16  }
  0x62   :  { %2419 = vset.pattern.permute.xlu1 %v2506_v2  ;;  %2420 = vset.pattern.permute.xlu2 %v2508_v4 }
  0x63   :  { %512 = vperm.xlu1 %2419, %v68_v15   ;;  %140 = vperm.xlu2 %2420, %v2637_v8  }
  0x66   :  { %v2690_v18 = vpop.permute.xlu2 %291 }
  0x67   :  { %v416_v47 = vmul.f32 %v2761_v39, %v2690_v18  ;;  %v84_v18 = vld [vmem:[%s4283_s20 + $0xc0] sm:$0xff] }
  0x69   :  { %160 = vperm.xlu0 %2446, %v2695_v19  }
  0x6b   :  { %2422 = vset.pattern.permute.xlu1 %v2508_v4  ;;  %2423 = vset.pattern.permute.xlu2 %v2507_v3 }
  0x6c   :  { %200 = vperm.xlu1 %2422, %v81_v22   ;;  %371 = vperm.xlu2 %2423, %v81_v22  }
  0x6f   :  { %v485_v27 = vpop.permute.xlu2 %484 }
  0x70   :  { %v609_v53 = vmul.f32 %v2763_v40, %v485_v27 }
  0x71   :  { %225 = vperm.xlu0 %2446, %v2718_v25  }
  0x74   :  { %2424 = vset.pattern.permute.xlu1 %v2506_v2  ;;  %2425 = vset.pattern.permute.xlu2 %v2506_v2 }
  0x75   :  { %516 = vperm.xlu1 %2424, %v2637_v8   ;;  %564 = vperm.xlu2 %2425, %v81_v22  }
  0x79   :  { %v296_v31 = vpop.permute.xlu2 %295  ;;  %250 = vperm.xlu0 %2446, %v2736_v30  }
  0x7a   :  { %v417_v6 = vmul.f32 %v2761_v39, %v296_v31 }
  0x7d   :  { %2426 = vset.pattern.permute.xlu1 %v2507_v3  ;;  %2427 = vset.pattern.permute.xlu2 %v2508_v4 }
  0x7e   :  { %327 = vperm.xlu1 %2426, %v2681_v16   ;;  %205 = vperm.xlu2 %2427, %v2652_v11   ;;  %v481_v33 = vpop.permute.xlu1 %480 }
  0x7f   :  { %v96_v34 = vpop.permute.xlu0 %95  ;;  %v608_v48 = vmul.f32 %v2763_v40, %v481_v33 }
  0x80   :  { %v254_v41 = vmul.f32 %v2752_v37, %v96_v34 }
  0x81   :  { %v300_v35 = vpop.permute.xlu2 %299  ;;  %175 = vperm.xlu0 %2446, %v2745_v32  }
  0x82   :  { %v418_v15 = vmul.f32 %v2761_v39, %v300_v35 }
  0x86   :  { %375 = vperm.xlu1 %2426, %v2652_v11   ;;  %2428 = vset.pattern.permute.xlu2 %v2506_v2 }
  0x87   :  { %520 = vperm.xlu2 %2428, %v2681_v16  }
  0x88   :  { %v101_v42 = vpop.permute.xlu1 %100  ;;  %v288_v43 = vpop.permute.xlu0 %287 }
  0x89   :  { %2459 = vset.pattern.permute.xlu0 %v2507_v3  ;;  %v255_v44 = vmul.f32 %v2752_v37, %v101_v42  ;;  %v415_v45 = vmul.f32 %v2761_v39, %v288_v43 }
  0x8a   :  { %335 = vperm.xlu0 %2459, %v2759_v38   ;;  %v116_v46 = vpop.permute.xlu2 %115 }
  0x8b   :  { %v447_v49 = vadd.f32 %v415_v45, %v254_v41  ;;  %v448_v51 = vadd.f32 %v416_v47, %v255_v44  ;;  %v258_v28 = vmul.f32 %v2752_v37, %v116_v46 }
  0x8d   :  { %v640_v52 = vadd.f32 %v608_v48, %v447_v49  ;;  %v641_v57 = vadd.f32 %v609_v53, %v448_v51 }
  0x8e   :  { %2429 = vset.pattern.permute.xlu1 %v2508_v4 }
  0x8f   :  { %150 = vperm.xlu1 %2429, %v2660_v12   ;;  %2430 = vset.pattern.permute.xlu2 %v2507_v3  ;;  %v676_v55 = vadd.f32 %v2777_v50, %v640_v52  ;;  %v677_v62 = vadd.f32 %v2777_v50, %v641_v57  ;;  %v77_v57 = vld [vmem:[%s4283_s20 + $0x88] sm:$0xff] }
  0x90   :  { %v106_v54 = vpop.permute.xlu1 %105  ;;  %331 = vperm.xlu2 %2430, %v2660_v12   ;;  %v304_v56 = vpop.permute.xlu0 %303 }
  0x91   :  { %v708_v58 = vmax.f32 %v676_v55, 0.0  ;;  %v709_v1 = vmax.f32 %v677_v62, 0.0  ;;  %v256_v7 = vmul.f32 %v2752_v37, %v106_v54  ;;  %v419_v27 = vmul.f32 %v2761_v39, %v304_v56 }
  0x92   :  { %v121_v60 = vpop.permute.xlu2 %120  ;;  %399 = vperm.xlu0 %2459, %v2788_v59  }
  0x93   :  { %2337 = vmatmul.msk.f32.vlgmr.msra.gmra.mxu0 %vm752_vm0, %v708_v58  ;;  %v449_v10 = vadd.f32 %v417_v6, %v256_v7  ;;  %v451_v34 = vadd.f32 %v419_v27, %v258_v28  ;;  %v259_v43 = vmul.f32 %v2752_v37, %v121_v60  ;;  %v2879_v28 = vld [vmem:[%s4283_s20 + $0xf0] sm:$0xff] }
  0x97   :  { %210 = vperm.xlu1 %2429, %v83_v61  }
  0x98   :  { %v111_v63 = vpop.permute.xlu1 %110  ;;  %379 = vperm.xlu2 %2430, %v83_v61   ;;  %v2796_v0 = vpop.permute.xlu0 %323 }
  0x99   :  { %v257_v11 = vmul.f32 %v2752_v37, %v111_v63 }
  0x9a   :  { %387 = vperm.xlu0 %2459, %v2669_v14  }
  0x9b   :  { %2338 = vmatmul.msk.f32.gmra.mxu0 %vm752_vm0, %v709_v1  ;;  %v501_v5 = vpop.permute.xlu2 %500  ;;  %v450_v20 = vadd.f32 %v418_v15, %v257_v11 }
  0x9c   :  { %v613_v48 = vmul.f32 %v2763_v40, %v501_v5 }
  0x9f   :  { %2431 = vset.pattern.permute.xlu1 %v2506_v2 }
  0xa0   :  { %572 = vperm.xlu1 %2431, %v83_v61   ;;  %2432 = vset.pattern.permute.xlu2 %v2508_v4 }
  0xa1   :  { %155 = vperm.xlu2 %2432, %v2759_v38   ;;  %v493_v8 = vpop.permute.xlu1 %492 }
  0xa2   :  { %v489_v9 = vpop.permute.xlu0 %488  ;;  %v611_v16 = vmul.f32 %v2763_v40, %v493_v8  ;;  %407 = vperm.xlu0 %2459, %v2879_v28  }
  0xa3   :  { %v610_v12 = vmul.f32 %v2763_v40, %v489_v9  ;;  %v2807_v13 = vpop.permute.xlu2 %504 }
  0xa4   :  { %v643_v22 = vadd.f32 %v611_v16, %v450_v20  ;;  %v614_v6 = vmul.f32 %v2763_v40, %v2807_v13  ;;  %v89_v13 = vld [vmem:[%s4283_s20 + $0xe8] sm:$0xff] }
  0xa5   :  { %v642_v17 = vadd.f32 %v610_v12, %v449_v10 }
  0xa6   :  { %v679_v31 = vadd.f32 %v2777_v50, %v643_v22 }
  0xa7   :  { %v678_v21 = vadd.f32 %v2777_v50, %v642_v17 }
  0xa8   :  { %2433 = vset.pattern.permute.xlu1 %v2508_v4  ;;  %v711_v36 = vmax.f32 %v679_v31, 0.0 }
  0xa9   :  { %215 = vperm.xlu1 %2433, %v84_v18   ;;  %v710_v23 = vmax.f32 %v678_v21, 0.0  ;;  %2434 = vset.pattern.permute.xlu2 %v2507_v3  ;;  %v497_v24 = vpop.permute.xlu1 %496 }
  0xaa   :  { %v509_v26 = vpop.permute.xlu0 %508  ;;  %383 = vperm.xlu2 %2434, %v84_v18   ;;  %v612_v29 = vmul.f32 %v2763_v40, %v497_v24 }
  0xab   :  { %2339 = vmatmul.msk.f32.gmra.mxu0 %vm752_vm0, %v710_v23  ;;  %v615_v8 = vmul.f32 %v2763_v40, %v509_v26 }
  0xac   :  { %v316_v33 = vpop.permute.xlu2 %315  ;;  %v644_v35 = vadd.f32 %v612_v29, %v451_v34 }
  0xad   :  { %v422_v61 = vmul.f32 %v2761_v39, %v316_v33 }
  0xae   :  { %v680_v45 = vadd.f32 %v2777_v50, %v644_v35 }
  0xb0   :  { %v712_v49 = vmax.f32 %v680_v45, 0.0 }
  0xb1   :  { %2435 = vset.pattern.permute.xlu1 %v2506_v2 }
  0xb2   :  { %528 = vperm.xlu1 %2435, %v2759_v38   ;;  %v2824_v41 = vpop.permute.xlu0 %568  ;;  %2436 = vset.pattern.permute.xlu2 %v2508_v4 }
  0xb3   :  { %v308_v42 = vpop.permute.xlu1 %307  ;;  %2340 = vmatmul.msk.f32.gmra.mxu0 %vm752_vm0, %v711_v36  ;;  %235 = vperm.xlu2 %2436, %v2788_v59  }
  0xb4   :  { %v420_v44 = vmul.f32 %v2761_v39, %v308_v42  ;;  %v320_v46 = vpop.permute.xlu2 %319 }
  0xb5   :  { %v423_v20 = vmul.f32 %v2761_v39, %v320_v46 }
  0xb6   :  { %v452_v47 = vadd.f32 %v420_v44, %v259_v43  ;;  %v424_v44 = vmul.f32 %v2761_v39, %v2796_v0  ;;  %v74_v0 = vld [vmem:[%s4283_s20 + $0x70] sm:$0xff] }
  0xb8   :  { %v645_v38 = vadd.f32 %v613_v48, %v452_v47  ;;  %v2897_v48 = vld [vmem:[%s4283_s20 + $0x78] sm:$0xff] }
  0xb9   :  { %347 = vperm.xlu0 %2459, %v2897_v48  }
  0xba   :  { %576 = vperm.xlu1 %2435, %v84_v18   ;;  %v2833_v51 = vpop.permute.xlu0 %524  ;;  %v681_v53 = vadd.f32 %v2777_v50, %v645_v38 }
  0xbb   :  { %v312_v52 = vpop.permute.xlu1 %311  ;;  %2341 = vmatmul.msk.f32.gmra.mxu0 %vm752_vm0, %v712_v49  ;;  %2437 = vset.pattern.permute.xlu2 %v2506_v2 }
  0xbc   :  { %592 = vperm.xlu2 %2437, %v2788_v59   ;;  %v713_v55 = vmax.f32 %v681_v53, 0.0  ;;  %v421_v62 = vmul.f32 %v2761_v39, %v312_v52 }
  0xbd   :  { %v2839_v54 = vpop.permute.xlu2 %140 }
  0xbe   :  { %v263_v45 = vmul.f32 %v2752_v37, %v2839_v54 }
  0xc0   :  { %v456_v52 = vadd.f32 %v424_v44, %v263_v45 }
  0xc2   :  { %2438 = vset.pattern.permute.xlu1 %v2507_v3  ;;  %v2842_v56 = vpop.permute.xlu0 %580 }
  0xc3   :  { %339 = vperm.xlu1 %2438, %v2695_v19   ;;  %2342 = vmatmul.msk.f32.gmra.mxu0 %vm752_vm0, %v713_v55 }
  0xc4   :  { %v131_v58 = vpop.permute.xlu1 %130  ;;  %2439 = vset.pattern.permute.xlu2 %v2508_v4 }
  0xc5   :  { %180 = vperm.xlu2 %2439, %v77_v57   ;;  %v261_v63 = vmul.f32 %v2752_v37, %v131_v58 }
  0xc6   :  { %v372_v59 = vpop.permute.xlu2 %371 }
  0xc7   :  { %v454_v9 = vadd.f32 %v422_v61, %v261_v63  ;;  %v436_v27 = vmul.f32 %v2761_v39, %v372_v59  ;;  %v2914_v59 = vld [vmem:[%s4283_s20 + $0x98] sm:$0xff] }
  0xc8   :  { %363 = vperm.xlu0 %2459, %v2914_v59  }
  0xc9   :  { %v647_v15 = vadd.f32 %v615_v8, %v454_v9 }
  0xcb   :  { %2440 = vset.pattern.permute.xlu1 %v2508_v4  ;;  %v126_v60 = vpop.permute.xlu0 %125  ;;  %v683_v22 = vadd.f32 %v2777_v50, %v647_v15  ;;  %v630_v15 = vmul.f32 %v2763_v40, %v2824_v41 }
  0xcc   :  { %v260_v1 = vmul.f32 %v2752_v37, %v126_v60  ;;  %220 = vperm.xlu1 %2440, %v2669_v14   ;;  %v136_v5 = vpop.permute.xlu1 %135 }
  0xcd   :  { %2441 = vset.pattern.permute.xlu2 %v2507_v3  ;;  %v262_v18 = vmul.f32 %v2752_v37, %v136_v5  ;;  %v715_v26 = vmax.f32 %v683_v22, 0.0 }
  0xce   :  { %v453_v7 = vadd.f32 %v421_v62, %v260_v1  ;;  %355 = vperm.xlu2 %2441, %v77_v57   ;;  %v78_v62 = vld [vmem:[%s4283_s20 + $0x90] sm:$0xff] }
  0xcf   :  { %v565_v11 = vpop.permute.xlu2 %564  ;;  %v455_v23 = vadd.f32 %v423_v20, %v262_v18 }
  0xd0   :  { %v646_v10 = vadd.f32 %v614_v6, %v453_v7  ;;  %v629_v31 = vmul.f32 %v2763_v40, %v565_v11 }
  0xd2   :  { %v682_v12 = vadd.f32 %v2777_v50, %v646_v10  ;;  %v2930_v10 = vld [vmem:[%s4283_s20 + $0xa0] sm:$0xff] }
  0xd3   :  { %v146_v17 = vpop.permute.xlu0 %145  ;;  %367 = vperm.xlu0 %2459, %v2930_v10  }
  0xd4   :  { %2442 = vset.pattern.permute.xlu1 %v2506_v2  ;;  %v714_v16 = vmax.f32 %v682_v12, 0.0  ;;  %v264_v61 = vmul.f32 %v2752_v37, %v146_v17 }
  0xd5   :  { %532 = vperm.xlu1 %2442, %v2695_v19   ;;  %v513_v14 = vpop.permute.xlu1 %512 }
  0xd6   :  { %2343 = vmatmul.msk.f32.gmra.mxu0 %vm752_vm0, %v714_v16  ;;  %2443 = vset.pattern.permute.xlu2 %v2508_v4  ;;  %v616_v21 = vmul.f32 %v2763_v40, %v513_v14 }
  0xd7   :  { %240 = vperm.xlu2 %2443, %v89_v13  }
  0xd8   :  { %v2872_v19 = vpop.permute.xlu2 %205  ;;  %v648_v24 = vadd.f32 %v616_v21, %v455_v23 }
  0xd9   :  { %v276_v16 = vmul.f32 %v2752_v37, %v2872_v19 }
  0xda   :  { %v684_v35 = vadd.f32 %v2777_v50, %v648_v24  ;;  %v619_v24 = vmul.f32 %v2763_v40, %v2833_v51 }
  0xdb   :  { %v2884_v34 = vpop.permute.xlu0 %160  ;;  %2464 = vset.pattern.permute.xlu0 %v2506_v2 }
  0xdc   :  { %v716_v46 = vmax.f32 %v684_v35, 0.0 }
  0xdd   :  { %2444 = vset.pattern.permute.xlu1 %v2507_v3 }
  0xde   :  { %403 = vperm.xlu1 %2444, %v89_v13   ;;  %v201_v29 = vpop.permute.xlu1 %200  ;;  %2344 = vmatmul.msk.f32.gmra.mxu0 %vm752_vm0, %v715_v26 }
  0xdf   :  { %v275_v33 = vmul.f32 %v2752_v37, %v201_v29  ;;  %2445 = vset.pattern.permute.xlu2 %v2506_v2 }
  0xe0   :  { %548 = vperm.xlu2 %2445, %v77_v57  }
  0xe1   :  { %v468_v36 = vadd.f32 %v436_v27, %v275_v33  ;;  %v521_v42 = vpop.permute.xlu2 %520 }
  0xe2   :  { %v618_v1 = vmul.f32 %v2763_v40, %v521_v42 }
  0xe3   :  { %v661_v43 = vadd.f32 %v629_v31, %v468_v36  ;;  %v2908_v54 = vpop.permute.xlu0 %225 }
  0xe5   :  { %v697_v47 = vadd.f32 %v2777_v50, %v661_v43 }
  0xe6   :  { %2447 = vset.pattern.permute.xlu1 %v2506_v2  ;;  %2345 = vmatmul.msk.f32.gmra.mxu0 %vm752_vm0, %v716_v46 }
  0xe7   :  { %596 = vperm.xlu1 %2447, %v89_v13   ;;  %v517_v38 = vpop.permute.xlu1 %516  ;;  %v729_v49 = vmax.f32 %v697_v47, 0.0 }
  0xe8   :  { %v617_v53 = vmul.f32 %v2763_v40, %v517_v38  ;;  %2448 = vset.pattern.permute.xlu2 %v2508_v4 }
  0xe9   :  { %2358 = vmatmul.msk.f32.vlgmr.msra.gmra.mxu2 %vm752_vm0, %v729_v49  ;;  %165 = vperm.xlu2 %2448, %v74_v0  }
  0xea   :  { %v649_v55 = vadd.f32 %v617_v53, %v456_v52  ;;  %v332_v57 = vpop.permute.xlu2 %331 }
  0xeb   :  { %v2925_v8 = vpop.permute.xlu0 %250  ;;  %v426_v41 = vmul.f32 %v2761_v39, %v332_v57 }
  0xec   :  { %v685_v58 = vadd.f32 %v2777_v50, %v649_v55 }
  0xee   :  { %v717_v60 = vmax.f32 %v685_v58, 0.0 }
  0xef   :  { %2449 = vset.pattern.permute.xlu1 %v2507_v3 }
  0xf0   :  { %343 = vperm.xlu1 %2449, %v74_v0   ;;  %v328_v63 = vpop.permute.xlu1 %327  ;;  %2346 = vmatmul.msk.f32.gmra.mxu0 %vm752_vm0, %v717_v60 }
  0xf1   :  { %v425_v5 = vmul.f32 %v2761_v39, %v328_v63  ;;  %185 = vperm.xlu2 %2448, %v78_v62  }
  0xf2   :  { %v380_v7 = vpop.permute.xlu2 %379 }
  0xf3   :  { %v457_v6 = vadd.f32 %v425_v5, %v264_v61  ;;  %v2942_v21 = vpop.permute.xlu0 %175  ;;  %v438_v45 = vmul.f32 %v2761_v39, %v380_v7  ;;  %v87_v61 = vld [vmem:[%s4283_s20 + $0xd8] sm:$0xff] }
  0xf5   :  { %v650_v9 = vadd.f32 %v618_v1, %v457_v6 }
  0xf7   :  { %v686_v11 = vadd.f32 %v2777_v50, %v650_v9 }
  0xf8   :  { %359 = vperm.xlu1 %2449, %v78_v62   ;;  %v376_v12 = vpop.permute.xlu1 %375 }
  0xf9   :  { %v437_v14 = vmul.f32 %v2761_v39, %v376_v12  ;;  %v718_v13 = vmax.f32 %v686_v11, 0.0  ;;  %2450 = vset.pattern.permute.xlu2 %v2507_v3 }
  0xfa   :  { %391 = vperm.xlu2 %2450, %v2718_v25  }
  0xfb   :  { %v469_v17 = vadd.f32 %v437_v14, %v276_v16  ;;  %2347 = vmatmul.msk.f32.gmra.mxu0 %vm752_vm0, %v718_v13  ;;  %v156_v18 = vpop.permute.xlu2 %155 }
  0xfc   :  { %v336_v33 = vpop.permute.xlu0 %335  ;;  %v266_v5 = vmul.f32 %v2752_v37, %v156_v18 }
  0xfd   :  { %v662_v20 = vadd.f32 %v630_v15, %v469_v17  ;;  %v427_v6 = vmul.f32 %v2761_v39, %v336_v33  ;;  %v1057_v17 = vld [vmem:[%s4261_s5 + $0x1f8] sm:$0xff] }
  0xfe   :  { %1407 = vmatpush.msrb.mxu0 %v1057_v17 }
  0xff   :  { %v698_v22 = vadd.f32 %v2777_v50, %v662_v20  ;;  %v459_v9 = vadd.f32 %v427_v6, %v266_v5 }
 0x100   :  { %2451 = vset.pattern.permute.xlu1 %v2506_v2 }
 0x101   :  { %536 = vperm.xlu1 %2451, %v74_v0   ;;  %v151_v19 = vpop.permute.xlu1 %150  ;;  %v730_v23 = vmax.f32 %v698_v22, 0.0 }
 0x102   :  { %v265_v26 = vmul.f32 %v2752_v37, %v151_v19  ;;  %2452 = vset.pattern.permute.xlu2 %v2508_v4 }
 0x103   :  { %2359 = vmatmul.msk.f32.gmra.mxu2 %vm752_vm0, %v730_v23  ;;  %245 = vperm.xlu2 %2452, %v2879_v28  }
 0x104   :  { %v458_v27 = vadd.f32 %v426_v41, %v265_v26  ;;  %v384_v29 = vpop.permute.xlu2 %383  ;;  %v400_v44 = vpop.permute.xlu0 %399 }
 0x105   :  { %v443_v38 = vmul.f32 %v2761_v39, %v400_v44  ;;  %v439_v15 = vmul.f32 %v2761_v39, %v384_v29 }
 0x106   :  { %v651_v31 = vadd.f32 %v619_v24, %v458_v27  ;;  %v1053_v27 = vld [vmem:[%s4261_s5 + $0x1d8] sm:$0xff] }
 0x107   :  { %1408 = vmatpush.msrb.mxu0 %v1053_v27 }
 0x108   :  { %v687_v35 = vadd.f32 %v2777_v50, %v651_v31 }
 0x109   :  { %552 = vperm.xlu1 %2451, %v78_v62   ;;  %v211_v36 = vpop.permute.xlu1 %210 }
 0x10a   :  { %v719_v42 = vmax.f32 %v687_v35, 0.0  ;;  %v277_v43 = vmul.f32 %v2752_v37, %v211_v36 }
 0x10b   :  { %2453 = vset.pattern.permute.xlu2 %v2506_v2 }
 0x10c   :  { %2348 = vmatmul.msk.f32.gmra.mxu0 %vm752_vm0, %v719_v42  ;;  %584 = vperm.xlu2 %2453, %v2718_v25   ;;  %v470_v49 = vadd.f32 %v438_v45, %v277_v43  ;;  %v388_v31 = vpop.permute.xlu0 %387 }
 0x10d   :  { %v236_v51 = vpop.permute.xlu2 %235  ;;  %v440_v42 = vmul.f32 %v2761_v39, %v388_v31  ;;  %v1025_v31 = vld [vmem:[%s4261_s5 + $0xf8] sm:$0xff] }
 0x10e   :  { %v282_v47 = vmul.f32 %v2752_v37, %v236_v51 }
 0x110   :  { %v475_v25 = vadd.f32 %v443_v38, %v282_v47 }
 0x111   :  { %600 = vperm.xlu1 %2451, %v2879_v28  }
 0x112   :  { %v573_v46 = vpop.permute.xlu1 %572 }
 0x113   :  { %v631_v0 = vmul.f32 %v2763_v40, %v573_v46 }
 0x114   :  { %2454 = vset.pattern.permute.xlu2 %v2508_v4 }
 0x115   :  { %v663_v52 = vadd.f32 %v631_v0, %v470_v49  ;;  %170 = vperm.xlu2 %2454, %v2897_v48   ;;  %v267_v49 = vmul.f32 %v2752_v37, %v2884_v34 }
 0x116   :  { %v593_v53 = vpop.permute.xlu2 %592 }
 0x117   :  { %v699_v55 = vadd.f32 %v2777_v50, %v663_v52  ;;  %v636_v57 = vmul.f32 %v2763_v40, %v593_v53 }
 0x119   :  { %2455 = vset.pattern.permute.xlu1 %v2508_v4  ;;  %v731_v28 = vmax.f32 %v699_v55, 0.0  ;;  %v668_v58 = vadd.f32 %v636_v57, %v475_v25 }
 0x11a   :  { %190 = vperm.xlu1 %2455, %v2914_v59  }
 0x11b   :  { %v216_v60 = vpop.permute.xlu1 %215  ;;  %2360 = vmatmul.msk.f32.gmra.mxu2 %vm752_vm0, %v731_v28  ;;  %v704_v62 = vadd.f32 %v2777_v50, %v668_v58 }
 0x11c   :  { %v278_v16 = vmul.f32 %v2752_v37, %v216_v60 }
 0x11d   :  { %230 = vperm.xlu2 %2454, %v87_v61   ;;  %v736_v63 = vmax.f32 %v704_v62, 0.0 }
 0x11e   :  { %v471_v22 = vadd.f32 %v439_v15, %v278_v16 }
 0x11f   :  { %v181_v1 = vpop.permute.xlu2 %180  ;;  %2365 = vmatmul.msk.f32.vlgmr.msra.gmra.mxu3 %vm752_vm0, %v736_v63 }
 0x120   :  { %v271_v29 = vmul.f32 %v2752_v37, %v181_v1 }
 0x122   :  { %2456 = vset.pattern.permute.xlu1 %v2507_v3 }
 0x123   :  { %395 = vperm.xlu1 %2456, %v87_v61  }
 0x124   :  { %v529_v7 = vpop.permute.xlu1 %528 }
 0x125   :  { %v620_v11 = vmul.f32 %v2763_v40, %v529_v7  ;;  %2457 = vset.pattern.permute.xlu2 %v2506_v2 }
 0x126   :  { %540 = vperm.xlu2 %2457, %v2897_v48  }
 0x127   :  { %v652_v12 = vadd.f32 %v620_v11, %v459_v9 }
 0x128   :  { %v356_v14 = vpop.permute.xlu2 %355 }
 0x129   :  { %v688_v13 = vadd.f32 %v2777_v50, %v652_v12  ;;  %v1033_v12 = vld [vmem:[%s4261_s5 + $0x138] sm:$0xff] }
 0x12b   :  { %411 = vperm.xlu1 %2456, %v2736_v30   ;;  %v720_v18 = vmax.f32 %v688_v13, 0.0 }
 0x12c   :  { %v577_v20 = vpop.permute.xlu1 %576 }
 0x12d   :  { %v632_v41 = vmul.f32 %v2763_v40, %v577_v20  ;;  %2349 = vmatmul.msk.f32.gmra.mxu0 %vm752_vm0, %v720_v18 }
 0x12e   :  { %556 = vperm.xlu2 %2457, %v2914_v59   ;;  %v432_v59 = vmul.f32 %v2761_v39, %v356_v14  ;;  %v280_v14 = vmul.f32 %v2752_v37, %v2908_v54 }
 0x12f   :  { %v664_v48 = vadd.f32 %v632_v41, %v471_v22  ;;  %v1029_v22 = vld [vmem:[%s4261_s5 + $0x118] sm:$0xff] }
 0x130   :  { %v464_v35 = vadd.f32 %v432_v59, %v271_v29  ;;  %v1056_v29 = vld [vmem:[%s4261_s5 + $0x1f0] sm:$0xff]  ;;  %v1051_v59 = vld [vmem:[%s4261_s5 + $0x1c8] sm:$0xff] }
 0x131   :  { %v700_v19 = vadd.f32 %v2777_v50, %v664_v48  ;;  %v241_v23 = vpop.permute.xlu2 %240  ;;  %1294 = vmatpush.msrb.mxu3 %v1056_v29 }
 0x132   :  { %v283_v63 = vmul.f32 %v2752_v37, %v241_v23  ;;  %v1055_v23 = vld [vmem:[%s4261_s5 + $0x1e8] sm:$0xff] }
 0x133   :  { %2458 = vset.pattern.permute.xlu1 %v2506_v2  ;;  %v732_v24 = vmax.f32 %v700_v19, 0.0  ;;  %1181 = vmatpush.msrb.mxu2 %v1055_v23 }
 0x134   :  { %588 = vperm.xlu1 %2458, %v87_v61   ;;  %v1041_v61 = vld [vmem:[%s4261_s5 + $0x178] sm:$0xff] }
 0x135   :  { %v340_v26 = vpop.permute.xlu1 %339  ;;  %2361 = vmatmul.msk.f32.gmra.mxu2 %vm752_vm0, %v732_v24 }
 0x136   :  { %604 = vperm.xlu2 %2457, %v2736_v30   ;;  %v1049_v30 = vld [vmem:[%s4261_s5 + $0x1b8] sm:$0xff]  ;;  %v428_v0 = vmul.f32 %v2761_v39, %v340_v26  ;;  %v408_v26 = vpop.permute.xlu0 %407  ;;  %1182 = vmatpush.msrb.mxu2 %v1051_v59 }
 0x137   :  { %1409 = vmatpush.msrb.mxu0 %v1049_v30 }
 0x138   :  { %v460_v55 = vadd.f32 %v428_v0, %v267_v49  ;;  %v1043_v0 = vld [vmem:[%s4261_s5 + $0x188] sm:$0xff] }
 0x13a   :  { %v549_v33 = vpop.permute.xlu2 %548 }
 0x13b   :  { %v625_v36 = vmul.f32 %v2763_v40, %v549_v33  ;;  %v1047_v33 = vld [vmem:[%s4261_s5 + $0x1a8] sm:$0xff] }
 0x13c   :  { %2460 = vset.pattern.permute.xlu1 %v2507_v3  ;;  %v633_v3 = vmul.f32 %v2763_v40, %v2842_v56  ;;  %v1045_v56 = vld [vmem:[%s4261_s5 + $0x198] sm:$0xff]  ;;  %1183 = vmatpush.msrb.mxu2 %v1047_v33  ;;  %v1023_v33 = vld [vmem:[%s4261_s5 + $0xe8] sm:$0xff] }
 0x13d   :  { %351 = vperm.xlu1 %2460, %v2745_v32   ;;  %v657_v51 = vadd.f32 %v625_v36, %v464_v35  ;;  %1410 = vmatpush.msrb.mxu0 %v1045_v56  ;;  %v1052_v36 = vld [vmem:[%s4261_s5 + $0x1d0] sm:$0xff]  ;;  %v1039_v56 = vld [vmem:[%s4261_s5 + $0x168] sm:$0xff] }
 0x13e   :  { %v221_v43 = vpop.permute.xlu1 %220  ;;  %2461 = vset.pattern.permute.xlu2 %v2508_v4  ;;  %1295 = vmatpush.msrb.mxu3 %v1052_v36 }
 0x13f   :  { %v279_v44 = vmul.f32 %v2752_v37, %v221_v43  ;;  %195 = vperm.xlu2 %2461, %v2930_v10   ;;  %v693_v45 = vadd.f32 %v2777_v50, %v657_v51  ;;  %1411 = vmatpush.msrb.mxu0 %v1041_v61  ;;  %v1048_v51 = vld [vmem:[%s4261_s5 + $0x1b0] sm:$0xff] }
 0x140   :  { %1296 = vmatpush.msrb.mxu3 %v1048_v51  ;;  %1184 = vmatpush.msrb.mxu2 %v1043_v0  ;;  %v1014_v51 = vld [vmem:[%s4261_s5 + $0xa0] sm:$0xff] }
 0x141   :  { %v472_v46 = vadd.f32 %v440_v42, %v279_v44  ;;  %v725_v47 = vmax.f32 %v693_v45, 0.0  ;;  %v1054_v42 = vld [vmem:[%s4261_s5 + $0x1e0] sm:$0xff] }
 0x142   :  { %1068 = vmatpush.msrb.mxu1 %v1054_v42  ;;  %1185 = vmatpush.msrb.mxu2 %v1039_v56 }
 0x143   :  { %v665_v38 = vadd.f32 %v633_v3, %v472_v46  ;;  %2354 = vmatmul.msk.f32.vlgmr.msra.gmra.mxu1 %vm752_vm0, %v725_v47  ;;  %v166_v52 = vpop.permute.xlu2 %165  ;;  %v1050_v3 = vld [vmem:[%s4261_s5 + $0x1c0] sm:$0xff]  ;;  %v1044_v46 = vld [vmem:[%s4261_s5 + $0x190] sm:$0xff] }
 0x144   :  { %v268_v35 = vmul.f32 %v2752_v37, %v166_v52  ;;  %1069 = vmatpush.msrb.mxu1 %v1050_v3  ;;  %1297 = vmatpush.msrb.mxu3 %v1044_v46  ;;  %v1021_v52 = vld [vmem:[%s4261_s5 + $0xd8] sm:$0xff]  ;;  %v1008_v3 = vld [vmem:[%s4261_s5 + $0x70] sm:$0xff]  ;;  %v1010_v46 = vld [vmem:[%s4261_s5 + $0x80] sm:$0xff] }
 0x145   :  { %2462 = vset.pattern.permute.xlu1 %v2506_v2  ;;  %v701_v4 = vadd.f32 %v2777_v50, %v665_v38 }
 0x146   :  { %544 = vperm.xlu1 %2462, %v2745_v32  }
 0x147   :  { %v533_v25 = vpop.permute.xlu1 %532  ;;  %v733_v53 = vmax.f32 %v701_v4, 0.0  ;;  %2463 = vset.pattern.permute.xlu2 %v2506_v2  ;;  %v1046_v4 = vld [vmem:[%s4261_s5 + $0x1a0] sm:$0xff] }
 0x148   :  { %v621_v34 = vmul.f32 %v2763_v40, %v533_v25  ;;  %560 = vperm.xlu2 %2463, %v2930_v10   ;;  %v1037_v10 = vld [vmem:[%s4261_s5 + $0x158] sm:$0xff]  ;;  %v1040_v25 = vld [vmem:[%s4261_s5 + $0x170] sm:$0xff]  ;;  %1070 = vmatpush.msrb.mxu1 %v1046_v4  ;;  %v1006_v4 = vld [vmem:[%s4261_s5 + $0x60] sm:$0xff] }
 0x149   :  { %2362 = vmatmul.msk.f32.gmra.mxu2 %vm752_vm0, %v733_v53  ;;  %1412 = vmatpush.msrb.mxu0 %v1037_v10  ;;  %v1032_v10 = vld [vmem:[%s4261_s5 + $0x130] sm:$0xff] }
 0x14a   :  { %v653_v57 = vadd.f32 %v621_v34, %v460_v55  ;;  %v348_v55 = vpop.permute.xlu0 %347  ;;  %1298 = vmatpush.msrb.mxu3 %v1040_v25 }
 0x14b   :  { %v3028_v28 = vpop.permute.xlu2 %185  ;;  %1413 = vmatpush.msrb.mxu0 %v1033_v12 }
 0x14c   :  { %v689_v32 = vadd.f32 %v2777_v50, %v653_v57  ;;  %v272_v53 = vmul.f32 %v2752_v37, %v3028_v28  ;;  %v1042_v57 = vld [vmem:[%s4261_s5 + $0x180] sm:$0xff] }
 0x14d   :  { %1414 = vmatpush.msrb.mxu0 %v1029_v22  ;;  %1071 = vmatpush.msrb.mxu1 %v1042_v57  ;;  %v1026_v22 = vld [vmem:[%s4261_s5 + $0x100] sm:$0xff] }
 0x14e   :  { %v721_v58 = vmax.f32 %v689_v32, 0.0  ;;  %v1036_v32 = vld [vmem:[%s4261_s5 + $0x150] sm:$0xff]  ;;  %v1002_v57 = vld [vmem:[%s4261_s5 + $0x40] sm:$0xff] }
 0x14f   :  { %1415 = vmatpush.msrb.mxu0 %v1025_v31  ;;  %1299 = vmatpush.msrb.mxu3 %v1036_v32  ;;  %v1018_v31 = vld [vmem:[%s4261_s5 + $0xc0] sm:$0xff] }
 0x150   :  { %v404_v60 = vpop.permute.xlu1 %403  ;;  %2350 = vmatmul.msk.f32.gmra.mxu0 %vm752_vm0, %v721_v58  ;;  %v430_v58 = vmul.f32 %v2761_v39, %v348_v55  ;;  %v1011_v55 = vld [vmem:[%s4261_s5 + $0x88] sm:$0xff] }
 0x151   :  { %v444_v2 = vmul.f32 %v2761_v39, %v404_v60  ;;  %1416 = vmatpush.msrb.mxu0 %v1021_v52  ;;  %1300 = vmatpush.msrb.mxu3 %v1032_v10  ;;  %v1004_v52 = vld [vmem:[%s4261_s5 + $0x50] sm:$0xff]  ;;  %v1009_v10 = vld [vmem:[%s4261_s5 + $0x78] sm:$0xff] }
 0x153   :  { %v476_v5 = vadd.f32 %v444_v2, %v283_v63  ;;  %v1038_v2 = vld [vmem:[%s4261_s5 + $0x160] sm:$0xff]  ;;  %v1035_v63 = vld [vmem:[%s4261_s5 + $0x148] sm:$0xff] }
 0x154   :  { %v392_v62 = vpop.permute.xlu2 %391  ;;  %1072 = vmatpush.msrb.mxu1 %v1038_v2  ;;  %1186 = vmatpush.msrb.mxu2 %v1035_v63  ;;  %v1003_v2 = vld [vmem:[%s4261_s5 + $0x48] sm:$0xff]  ;;  %v994_v63 = vld [vmem:[%s4261_s5] sm:$0xff] }
 0x155   :  { %v441_v13 = vmul.f32 %v2761_v39, %v392_v62 }
 0x157   :  { %v473_v18 = vadd.f32 %v441_v13, %v280_v14  ;;  %v1024_v13 = vld [vmem:[%s4261_s5 + $0xf0] sm:$0xff] }
 0x159   :  { %v597_v1 = vpop.permute.xlu1 %596 }
 0x15a   :  { %v637_v6 = vmul.f32 %v2763_v40, %v597_v1 }
 0x15c   :  { %v669_v7 = vadd.f32 %v637_v6, %v476_v5  ;;  %v1034_v5 = vld [vmem:[%s4261_s5 + $0x140] sm:$0xff]  ;;  %v1028_v6 = vld [vmem:[%s4261_s5 + $0x110] sm:$0xff] }
 0x15d   :  { %v3041_v9 = vpop.permute.xlu2 %245  ;;  %1073 = vmatpush.msrb.mxu1 %v1034_v5  ;;  %1301 = vmatpush.msrb.mxu3 %v1028_v6  ;;  %v999_v5 = vld [vmem:[%s4261_s5 + $0x28] sm:$0xff] }
 0x15e   :  { %v705_v11 = vadd.f32 %v2777_v50, %v669_v7  ;;  %v284_v7 = vmul.f32 %v2752_v37, %v3041_v9  ;;  %v1031_v9 = vld [vmem:[%s4261_s5 + $0x128] sm:$0xff] }
 0x15f   :  { %1187 = vmatpush.msrb.mxu2 %v1031_v9  ;;  %1302 = vmatpush.msrb.mxu3 %v1024_v13 }
 0x160   :  { %v737_v15 = vmax.f32 %v705_v11, 0.0  ;;  %v445_v11 = vmul.f32 %v2761_v39, %v408_v26  ;;  %v1027_v26 = vld [vmem:[%s4261_s5 + $0x108] sm:$0xff] }
 0x161   :  { %1188 = vmatpush.msrb.mxu2 %v1027_v26  ;;  %v1001_v26 = vld [vmem:[%s4261_s5 + $0x38] sm:$0xff] }
 0x162   :  { %v344_v16 = vpop.permute.xlu1 %343  ;;  %2366 = vmatmul.msk.f32.gmra.mxu3 %vm752_vm0, %v737_v15 }
 0x163   :  { %v429_v24 = vmul.f32 %v2761_v39, %v344_v16  ;;  %v1030_v16 = vld [vmem:[%s4261_s5 + $0x120] sm:$0xff]  ;;  %1189 = vmatpush.msrb.mxu2 %v1023_v33 }
 0x164   :  { %1074 = vmatpush.msrb.mxu1 %v1030_v16 }
 0x165   :  { %v461_v30 = vadd.f32 %v429_v24, %v268_v35  ;;  %v1022_v24 = vld [vmem:[%s4261_s5 + $0xe0] sm:$0xff]  ;;  %v1012_v35 = vld [vmem:[%s4261_s5 + $0x90] sm:$0xff] }
 0x166   :  { %v585_v17 = vpop.permute.xlu2 %584  ;;  %1075 = vmatpush.msrb.mxu1 %v1026_v22 }
 0x167   :  { %v634_v20 = vmul.f32 %v2763_v40, %v585_v17 }
 0x168   :  { %1076 = vmatpush.msrb.mxu1 %v1022_v24 }
 0x169   :  { %v666_v41 = vadd.f32 %v634_v20, %v473_v18  ;;  %v1017_v20 = vld [vmem:[%s4261_s5 + $0xb8] sm:$0xff] }
 0x16a   :  { %v360_v48 = vpop.permute.xlu1 %359  ;;  %1417 = vmatpush.msrb.mxu0 %v1017_v20  ;;  %1077 = vmatpush.msrb.mxu1 %v1018_v31 }
 0x16b   :  { %v702_v19 = vadd.f32 %v2777_v50, %v666_v41  ;;  %v433_v47 = vmul.f32 %v2761_v39, %v360_v48  ;;  %v1020_v48 = vld [vmem:[%s4261_s5 + $0xd0] sm:$0xff] }
 0x16c   :  { %1303 = vmatpush.msrb.mxu3 %v1020_v48  ;;  %1078 = vmatpush.msrb.mxu1 %v1014_v51  ;;  %v997_v51 = vld [vmem:[%s4261_s5 + $0x18] sm:$0xff] }
 0x16d   :  { %v734_v54 = vmax.f32 %v702_v19, 0.0  ;;  %v465_v61 = vadd.f32 %v433_v47, %v272_v53  ;;  %v477_v19 = vadd.f32 %v445_v11, %v284_v7  ;;  %v1015_v47 = vld [vmem:[%s4261_s5 + $0xa8] sm:$0xff] }
 0x16e   :  { %1079 = vmatpush.msrb.mxu1 %v1010_v46  ;;  %v995_v11 = vld [vmem:[%s4261_s5 + $0x8] sm:$0xff] }
 0x16f   :  { %2363 = vmatmul.msk.f32.gmra.mxu2 %vm752_vm0, %v734_v54  ;;  %v171_v27 = vpop.permute.xlu2 %170 }
 0x170   :  { %v269_v62 = vmul.f32 %v2752_v37, %v171_v27  ;;  %v1016_v27 = vld [vmem:[%s4261_s5 + $0xb0] sm:$0xff]  ;;  %1080 = vmatpush.msrb.mxu1 %v1006_v4 }
 0x171   :  { %1304 = vmatpush.msrb.mxu3 %v1016_v27 }
 0x172   :  { %v462_v12 = vadd.f32 %v430_v58, %v269_v62  ;;  %v1007_v58 = vld [vmem:[%s4261_s5 + $0x68] sm:$0xff]  ;;  %1081 = vmatpush.msrb.mxu1 %v1002_v57 }
 0x173   :  { %v537_v43 = vpop.permute.xlu1 %536  ;;  %1305 = vmatpush.msrb.mxu3 %v1012_v35 }
 0x174   :  { %v622_v44 = vmul.f32 %v2763_v40, %v537_v43 }
 0x175   :  { %1306 = vmatpush.msrb.mxu3 %v1008_v3 }
 0x176   :  { %v654_v45 = vadd.f32 %v622_v44, %v461_v30  ;;  %v1013_v30 = vld [vmem:[%s4261_s5 + $0x98] sm:$0xff]  ;;  %v1019_v44 = vld [vmem:[%s4261_s5 + $0xc8] sm:$0xff] }
 0x177   :  { %v3091_v38 = vpop.permute.xlu2 %230  ;;  %1418 = vmatpush.msrb.mxu0 %v1013_v30  ;;  %1190 = vmatpush.msrb.mxu2 %v1019_v44 }
 0x178   :  { %v690_v49 = vadd.f32 %v2777_v50, %v654_v45  ;;  %1307 = vmatpush.msrb.mxu3 %v1004_v52 }
 0x179   :  { %1191 = vmatpush.msrb.mxu2 %v1015_v47  ;;  %1419 = vmatpush.msrb.mxu0 %v1009_v10 }
 0x17a   :  { %v722_v34 = vmax.f32 %v690_v49, 0.0  ;;  %v364_v49 = vpop.permute.xlu0 %363 }
 0x17b   :  { %v553_v60 = vpop.permute.xlu1 %552  ;;  %v434_v56 = vmul.f32 %v2761_v39, %v364_v49  ;;  %1192 = vmatpush.msrb.mxu2 %v1011_v55 }
 0x17c   :  { %v626_v28 = vmul.f32 %v2763_v40, %v553_v60  ;;  %2351 = vmatmul.msk.f32.gmra.mxu0 %vm752_vm0, %v722_v34  ;;  %v1000_v34 = vld [vmem:[%s4261_s5 + $0x30] sm:$0xff] }
 0x17d   :  { %v996_v60 = vld [vmem:[%s4261_s5 + $0x10] sm:$0xff]  ;;  %1308 = vmatpush.msrb.mxu3 %v1000_v34  ;;  %1193 = vmatpush.msrb.mxu2 %v1007_v58 }
 0x17e   :  { %v658_v1 = vadd.f32 %v626_v28, %v465_v61  ;;  %v998_v61 = vld [vmem:[%s4261_s5 + $0x20] sm:$0xff] }
 0x17f   :  { %1309 = vmatpush.msrb.mxu3 %v996_v60  ;;  %1082 = vmatpush.msrb.mxu1 %v998_v61 }
 0x180   :  { %v694_v15 = vadd.f32 %v2777_v50, %v658_v1  ;;  %v541_v14 = vpop.permute.xlu2 %540  ;;  %1194 = vmatpush.msrb.mxu2 %v1003_v2 }
 0x181   :  { %v623_v17 = vmul.f32 %v2763_v40, %v541_v14  ;;  %1083 = vmatpush.msrb.mxu1 %v994_v63  ;;  %v285_v14 = vmul.f32 %v2752_v37, %v2925_v8  ;;  %v2478_v8 = vld [vmem:[%s4286_s24] ss:$0 sm:$0xff] }
 0x182   :  { %v726_v18 = vmax.f32 %v694_v15, 0.0  ;;  %1195 = vmatpush.msrb.mxu2 %v999_v5  ;;  %v1005_v15 = vld [vmem:[%s4261_s5 + $0x58] sm:$0xff] }
 0x183   :  { %v601_v41 = vpop.permute.xlu1 %600  ;;  %v655_v23 = vadd.f32 %v623_v17, %v462_v12  ;;  %v866_v12 = vpop.f32.mrf.mxu0  ;;  %1420 = vmatpush.msrb.mxu0 %v1005_v15 }
 0x184   :  { %v638_v54 = vmul.f32 %v2763_v40, %v601_v41  ;;  %2355 = vmatmul.msk.f32.gmra.mxu1 %vm752_vm0, %v726_v18  ;;  %1196 = vmatpush.msrb.mxu2 %v995_v11  ;;  %v368_v17 = vpop.permute.xlu0 %367 }
 0x185   :  { %v691_v59 = vadd.f32 %v2777_v50, %v655_v23  ;;  %v435_v22 = vmul.f32 %v2761_v39, %v368_v17  ;;  %1421 = vmatpush.msrb.mxu0 %v1001_v26 }
 0x186   :  { %v670_v29 = vadd.f32 %v638_v54, %v477_v19 }
 0x187   :  { %v723_v42 = vmax.f32 %v691_v59, 0.0  ;;  %v3267_v59 = vld [vmem:[%s4260_s4] ss:$0 sm:$0xff]  ;;  %1422 = vmatpush.msrb.mxu0 %v997_v51 }
 0x188   :  { %v706_v36 = vadd.f32 %v2777_v50, %v670_v29  ;;  %v557_v43 = vpop.permute.xlu2 %556  ;;  %v281_v29 = vmul.f32 %v2752_v37, %v3091_v38  ;;  %v867_v30 = vadd.f32 %v3267_v59, %v866_v12 }
 0x189   :  { %2352 = vmatmul.msk.f32.gmra.mxu0 %vm752_vm0, %v723_v42  ;;  %v627_v25 = vmul.f32 %v2763_v40, %v557_v43 }
 0x18a   :  { %v738_v45 = vmax.f32 %v706_v36, 0.0  ;;  %v962_v47 = vmax.f32 %v867_v30, 0.0 }
 0x18b   :  { %v869_v27 = vpop.f32.mrf.mxu0 }
 0x18c   :  { %v191_v0 = vpop.permute.xlu1 %190  ;;  %2367 = vmatmul.msk.f32.gmra.mxu3 %vm752_vm0, %v738_v45 }
 0x18d   :  { %v273_v53 = vmul.f32 %v2752_v37, %v191_v0  ;;  %v870_v0 = vadd.f32 %v3267_v59, %v869_v27 }
 0x18f   :  { %v466_v32 = vadd.f32 %v434_v56, %v273_v53  ;;  %v963_v4 = vmax.f32 %v870_v0, 0.0  ;;  %v270_v56 = vmul.f32 %v2752_v37, %v2942_v21 }
 0x190   :  { %v605_v28 = vpop.permute.xlu2 %604 }
 0x191   :  { %v659_v62 = vadd.f32 %v627_v25, %v466_v32  ;;  %v639_v18 = vmul.f32 %v2763_v40, %v605_v28 }
 0x193   :  { %v695_v1 = vadd.f32 %v2777_v50, %v659_v62  ;;  %v872_v3 = vpop.f32.mrf.mxu0 }
 0x194   :  { %v873_v57 = vadd.f32 %v3267_v59, %v872_v3 }
 0x195   :  { %v396_v6 = vpop.permute.xlu1 %395  ;;  %v727_v7 = vmax.f32 %v695_v1, 0.0 }
 0x196   :  { %v442_v48 = vmul.f32 %v2761_v39, %v396_v6  ;;  %v964_v60 = vmax.f32 %v873_v57, 0.0 }
 0x197   :  { %2356 = vmatmul.msk.f32.gmra.mxu1 %vm752_vm0, %v727_v7 }
 0x198   :  { %v474_v36 = vadd.f32 %v442_v48, %v281_v29 }
 0x199   :  { %v196_v50 = vpop.permute.xlu2 %195 }
 0x19a   :  { %v274_v9 = vmul.f32 %v2752_v37, %v196_v50 }
 0x19b   :  { %v875_v25 = vpop.f32.mrf.mxu0 }
 0x19c   :  { %v467_v23 = vadd.f32 %v435_v22, %v274_v9  ;;  %v876_v37 = vadd.f32 %v3267_v59, %v875_v25  ;;  %v3292_v22 = vpop.f32.mrf.mxu2 }
 0x19d   :  { %v412_v16 = vpop.permute.xlu1 %411 }
 0x19e   :  { %v446_v13 = vmul.f32 %v2761_v39, %v412_v16  ;;  %v965_v21 = vmax.f32 %v876_v37, 0.0 }
 0x1a0   :  { %v478_v20 = vadd.f32 %v446_v13, %v285_v14 }
 0x1a2   :  { %v671_v41 = vadd.f32 %v639_v18, %v478_v20  ;;  %v561_v19 = vpop.permute.xlu2 %560 }
 0x1a3   :  { %v628_v54 = vmul.f32 %v2763_v40, %v561_v19 }
 0x1a4   :  { %v707_v24 = vadd.f32 %v2478_v8, %v671_v41 }
 0x1a5   :  { %v660_v31 = vadd.f32 %v628_v54, %v467_v23  ;;  %v3295_v23 = vpop.f32.mrf.mxu2 }
 0x1a6   :  { %v589_v33 = vpop.permute.xlu1 %588  ;;  %v739_v35 = vmax.f32 %v707_v24, 0.0 }
 0x1a7   :  { %v635_v42 = vmul.f32 %v2763_v40, %v589_v33  ;;  %v696_v43 = vadd.f32 %v2478_v8, %v660_v31  ;;  %v3301_v31 = vpop.f32.mrf.mxu3 }
 0x1a8   :  { %2368 = vmatmul.msk.f32.gmra.mxu3 %vm752_vm0, %v739_v35 }
 0x1a9   :  { %v667_v38 = vadd.f32 %v635_v42, %v474_v36  ;;  %v728_v44 = vmax.f32 %v696_v43, 0.0 }
 0x1ab   :  { %v703_v45 = vadd.f32 %v2478_v8, %v667_v38  ;;  %2357 = vmatmul.msk.f32.gmra.mxu1 %vm752_vm0, %v728_v44 }
 0x1ad   :  { %v735_v46 = vmax.f32 %v703_v45, 0.0  ;;  %v3298_v27 = vpop.f32.mrf.mxu2 }
 0x1af   :  { %v352_v49 = vpop.permute.xlu1 %351  ;;  %2364 = vmatmul.msk.f32.gmra.mxu2 %vm752_vm0, %v735_v46 }
 0x1b0   :  { %1310 = vmatmul.f32.vlgmr.msrb.gmra.mxu3 %v962_v47  ;;  %v431_v52 = vmul.f32 %v2761_v39, %v352_v49  ;;  %v878_v39 = vpop.f32.mrf.mxu0 }
 0x1b2   :  { %v463_v55 = vadd.f32 %v431_v52, %v270_v56 }
 0x1b3   :  { %1084 = vmatmul.f32.vlgmr.msrb.gmra.mxu1 %v962_v47 }
 0x1b7   :  { %1197 = vmatmul.f32.vlgmr.msrb.gmra.mxu2 %v962_v47 }
 0x1b8   :  { %v545_v53 = vpop.permute.xlu1 %544  ;;  %1313 = vmatmul.f32.gmra.mxu3 %v963_v4  ;;  %v881_v62 = vpop.f32.mrf.mxu0 }
 0x1b9   :  { %v624_v34 = vmul.f32 %v2763_v40, %v545_v53  ;;  %v879_v40 = vadd.f32 %v3267_v59, %v878_v39  ;;  %v882_v2 = vadd.f32 %v3267_v59, %v881_v62  ;;  %v3305_v42 = vpop.f32.mrf.mxu2  ;;  %v1847_v53 = vld [vmem:[%s4263_s7 + $0xf8] sm:$0xff] }
 0x1ba   :  { %1921 = vmatpush.msra.mxu2 %v1847_v53  ;;  %v933_v53 = vadd.f32 %v3267_v59, %v3295_v23  ;;  %v936_v23 = vadd.f32 %v3267_v59, %v3298_v27 }
 0x1bb   :  { %v656_v32 = vadd.f32 %v624_v34, %v463_v55  ;;  %1087 = vmatmul.f32.gmra.mxu1 %v963_v4  ;;  %v966_v28 = vmax.f32 %v879_v40, 0.0  ;;  %v967_v63 = vmax.f32 %v882_v2, 0.0  ;;  %v1831_v55 = vld [vmem:[%s4263_s7 + $0x78] sm:$0xff]  ;;  %v1846_v2 = vld [vmem:[%s4263_s7 + $0xf0] sm:$0xff] }
 0x1bc   :  { %v1863_v34 = vld [vmem:[%s4263_s7 + $0x178] sm:$0xff]  ;;  %1901 = vmatpush.msra.mxu1 %v1831_v55  ;;  %1922 = vmatpush.msra.mxu2 %v1846_v2 }
 0x1bd   :  { %v692_v58 = vadd.f32 %v2478_v8, %v656_v32  ;;  %1941 = vmatpush.msra.mxu3 %v1863_v34  ;;  %v984_v34 = vmax.f32 %v933_v53, 0.0 }
 0x1bf   :  { %1200 = vmatmul.f32.gmra.mxu2 %v963_v4  ;;  %v724_v61 = vmax.f32 %v692_v58, 0.0 }
 0x1c0   :  { %1316 = vmatmul.f32.gmra.mxu3 %v964_v60  ;;  %v884_v10 = vpop.f32.mrf.mxu0  ;;  %v917_v26 = vpop.f32.mrf.mxu1 }
 0x1c1   :  { %2353 = vmatmul.msk.f32.gmra.mxu0 %vm752_vm0, %v724_v61  ;;  %v885_v1 = vadd.f32 %v3267_v59, %v884_v10  ;;  %v918_v62 = vadd.f32 %v3267_v59, %v917_v26  ;;  %v1830_v10 = vld [vmem:[%s4263_s7 + $0x70] sm:$0xff] }
 0x1c2   :  { %1902 = vmatpush.msra.mxu1 %v1830_v10 }
 0x1c3   :  { %1090 = vmatmul.f32.gmra.mxu1 %v964_v60  ;;  %v968_v6 = vmax.f32 %v885_v1, 0.0  ;;  %v979_v1 = vmax.f32 %v918_v62, 0.0 }
 0x1c7   :  { %1203 = vmatmul.f32.gmra.mxu2 %v964_v60 }
 0x1c8   :  { %1319 = vmatmul.f32.gmra.mxu3 %v965_v21  ;;  %v887_v5 = vpop.f32.mrf.mxu0 }
 0x1c9   :  { %1423 = vmatmul.f32.vlgmr.msrb.gmra.mxu0 %v962_v47  ;;  %v888_v7 = vadd.f32 %v3267_v59, %v887_v5 }
 0x1cb   :  { %1093 = vmatmul.f32.gmra.mxu1 %v965_v21  ;;  %v969_v11 = vmax.f32 %v888_v7, 0.0 }
 0x1cc   :  { %v3312_v45 = vpop.f32.mrf.mxu2 }
 0x1cf   :  { %1206 = vmatmul.f32.gmra.mxu2 %v965_v21 }
 0x1d0   :  { %1322 = vmatmul.f32.gmra.mxu3 %v966_v28  ;;  %v890_v50 = vpop.f32.mrf.mxu0 }
 0x1d1   :  { %1426 = vmatmul.f32.gmra.mxu0 %v963_v4  ;;  %v891_v12 = vadd.f32 %v3267_v59, %v890_v50 }
 0x1d3   :  { %1096 = vmatmul.f32.gmra.mxu1 %v966_v28  ;;  %v970_v15 = vmax.f32 %v891_v12, 0.0 }
 0x1d7   :  { %1209 = vmatmul.f32.gmra.mxu2 %v966_v28 }
 0x1d8   :  { %1325 = vmatmul.f32.gmra.mxu3 %v967_v63  ;;  %v893_v16 = vpop.f32.mrf.mxu0 }
 0x1d9   :  { %1429 = vmatmul.f32.gmra.mxu0 %v964_v60  ;;  %v894_v14 = vadd.f32 %v3267_v59, %v893_v16 }
 0x1db   :  { %1099 = vmatmul.f32.gmra.mxu1 %v967_v63  ;;  %v971_v13 = vmax.f32 %v894_v14, 0.0 }
 0x1df   :  { %1212 = vmatmul.f32.gmra.mxu2 %v967_v63 }
 0x1e0   :  { %1328 = vmatmul.f32.gmra.mxu3 %v968_v6  ;;  %v896_v17 = vpop.f32.mrf.mxu0 }
 0x1e1   :  { %1432 = vmatmul.f32.gmra.mxu0 %v965_v21  ;;  %v897_v18 = vadd.f32 %v3267_v59, %v896_v17 }
 0x1e3   :  { %1102 = vmatmul.f32.gmra.mxu1 %v968_v6  ;;  %v972_v9 = vmax.f32 %v897_v18, 0.0  ;;  %v1845_v18 = vld [vmem:[%s4263_s7 + $0xe8] sm:$0xff] }
 0x1e4   :  { %1923 = vmatpush.msra.mxu2 %v1845_v18 }
 0x1e5   :  { %v3308_v43 = vpop.f32.mrf.mxu3 }
 0x1e7   :  { %1215 = vmatmul.f32.gmra.mxu2 %v968_v6 }
 0x1e8   :  { %1331 = vmatmul.f32.gmra.mxu3 %v969_v11  ;;  %v899_v20 = vpop.f32.mrf.mxu0 }
 0x1e9   :  { %1435 = vmatmul.f32.gmra.mxu0 %v966_v28  ;;  %v900_v41 = vadd.f32 %v3267_v59, %v899_v20  ;;  %v1861_v20 = vld [vmem:[%s4263_s7 + $0x168] sm:$0xff] }
 0x1eb   :  { %1105 = vmatmul.f32.gmra.mxu1 %v969_v11  ;;  %v973_v48 = vmax.f32 %v900_v41, 0.0 }
 0x1ef   :  { %1218 = vmatmul.f32.gmra.mxu2 %v969_v11 }
 0x1f0   :  { %1334 = vmatmul.f32.gmra.mxu3 %v970_v15  ;;  %v902_v19 = vpop.f32.mrf.mxu0 }
 0x1f1   :  { %1438 = vmatmul.f32.gmra.mxu0 %v967_v63  ;;  %v903_v54 = vadd.f32 %v3267_v59, %v902_v19  ;;  %v1862_v63 = vld [vmem:[%s4263_s7 + $0x170] sm:$0xff] }
 0x1f2   :  { %v3319_v0 = vpop.f32.mrf.mxu2  ;;  %1942 = vmatpush.msra.mxu3 %v1862_v63  ;;  %v939_v63 = vadd.f32 %v3267_v59, %v3305_v42  ;;  %v1843_v42 = vld [vmem:[%s4263_s7 + $0xd8] sm:$0xff] }
 0x1f3   :  { %1108 = vmatmul.f32.gmra.mxu1 %v970_v15  ;;  %v974_v8 = vmax.f32 %v903_v54, 0.0  ;;  %v945_v18 = vadd.f32 %v3267_v59, %v3319_v0  ;;  %v1859_v0 = vld [vmem:[%s4263_s7 + $0x158] sm:$0xff] }
 0x1f4   :  { %1943 = vmatpush.msra.mxu3 %v1861_v20 }
 0x1f7   :  { %1221 = vmatmul.f32.gmra.mxu2 %v970_v15 }
 0x1f8   :  { %1337 = vmatmul.f32.gmra.mxu3 %v971_v13  ;;  %v905_v24 = vpop.f32.mrf.mxu0 }
 0x1f9   :  { %1441 = vmatmul.f32.gmra.mxu0 %v968_v6  ;;  %v906_v29 = vadd.f32 %v3267_v59, %v905_v24 }
 0x1fb   :  { %1111 = vmatmul.f32.gmra.mxu1 %v971_v13  ;;  %v975_v33 = vmax.f32 %v906_v29, 0.0 }
 0x1ff   :  { %1224 = vmatmul.f32.gmra.mxu2 %v971_v13 }
 0x200   :  { %1340 = vmatmul.f32.gmra.mxu3 %v972_v9  ;;  %v908_v35 = vpop.f32.mrf.mxu0 }
 0x201   :  { %1444 = vmatmul.f32.gmra.mxu0 %v969_v11  ;;  %v3303_v36 = vpop.f32.mrf.mxu1  ;;  %v909_v51 = vadd.f32 %v3267_v59, %v908_v35 }
 0x202   :  { %v921_v11 = vadd.f32 %v3267_v59, %v3303_v36  ;;  %v930_v36 = vadd.f32 %v3267_v59, %v3292_v22 }
 0x203   :  { %1114 = vmatmul.f32.gmra.mxu1 %v972_v9  ;;  %v976_v38 = vmax.f32 %v909_v51, 0.0 }
 0x204   :  { %v980_v12 = vmax.f32 %v921_v11, 0.0 }
 0x207   :  { %1227 = vmatmul.f32.gmra.mxu2 %v972_v9 }
 0x208   :  { %1343 = vmatmul.f32.gmra.mxu3 %v973_v48  ;;  %v911_v30 = vpop.f32.mrf.mxu0 }
 0x209   :  { %1447 = vmatmul.f32.gmra.mxu0 %v970_v15  ;;  %v912_v3 = vadd.f32 %v3267_v59, %v911_v30  ;;  %v1828_v30 = vld [vmem:[%s4263_s7 + $0x60] sm:$0xff] }
 0x20b   :  { %1117 = vmatmul.f32.gmra.mxu1 %v973_v48  ;;  %v977_v47 = vmax.f32 %v912_v3, 0.0  ;;  %v983_v3 = vmax.f32 %v930_v36, 0.0 }
 0x20f   :  { %1230 = vmatmul.f32.gmra.mxu2 %v973_v48  ;;  %v3315_v46 = vpop.f32.mrf.mxu3 }
 0x210   :  { %1346 = vmatmul.f32.gmra.mxu3 %v974_v8 }
 0x211   :  { %1450 = vmatmul.f32.gmra.mxu0 %v971_v13 }
 0x213   :  { %1120 = vmatmul.f32.gmra.mxu1 %v974_v8 }
 0x214   :  { %v3310_v44 = vpop.f32.mrf.mxu1 }
 0x215   :  { %v924_v13 = vadd.f32 %v3267_v59, %v3310_v44  ;;  %v1860_v44 = vld [vmem:[%s4263_s7 + $0x160] sm:$0xff] }
 0x216   :  { %1944 = vmatpush.msra.mxu3 %v1860_v44 }
 0x217   :  { %1233 = vmatmul.f32.gmra.mxu2 %v974_v8  ;;  %v981_v41 = vmax.f32 %v924_v13, 0.0  ;;  %v942_v13 = vadd.f32 %v3267_v59, %v3312_v45  ;;  %v1827_v45 = vld [vmem:[%s4263_s7 + $0x58] sm:$0xff] }
 0x218   :  { %1349 = vmatmul.f32.gmra.mxu3 %v975_v33 }
 0x219   :  { %1453 = vmatmul.f32.gmra.mxu0 %v972_v9  ;;  %v1829_v9 = vld [vmem:[%s4263_s7 + $0x68] sm:$0xff]  ;;  %1945 = vmatpush.msra.mxu3 %v1859_v0 }
 0x21a   :  { %1903 = vmatpush.msra.mxu1 %v1829_v9 }
 0x21b   :  { %1123 = vmatmul.f32.gmra.mxu1 %v975_v33 }
 0x21c   :  { %1904 = vmatpush.msra.mxu1 %v1828_v30  ;;  %v3489_v30 = vmax.f32 %v942_v13, 0.0 }
 0x21e   :  { %1905 = vmatpush.msra.mxu1 %v1827_v45 }
 0x21f   :  { %1236 = vmatmul.f32.gmra.mxu2 %v975_v33 }
 0x220   :  { %1352 = vmatmul.f32.gmra.mxu3 %v976_v38 }
 0x221   :  { %1456 = vmatmul.f32.gmra.mxu0 %v973_v48 }
 0x223   :  { %1126 = vmatmul.f32.gmra.mxu1 %v976_v38 }
 0x227   :  { %1239 = vmatmul.f32.gmra.mxu2 %v976_v38 }
 0x228   :  { %1355 = vmatmul.f32.gmra.mxu3 %v977_v47  ;;  %v3317_v49 = vpop.f32.mrf.mxu1 }
 0x229   :  { %1459 = vmatmul.f32.gmra.mxu0 %v974_v8  ;;  %v927_v8 = vadd.f32 %v3267_v59, %v3317_v49 }
 0x22b   :  { %v3321_v52 = vpop.f32.mrf.mxu3  ;;  %1129 = vmatmul.f32.gmra.mxu1 %v977_v47  ;;  %v982_v26 = vmax.f32 %v927_v8, 0.0 }
 0x22f   :  { %1242 = vmatmul.f32.gmra.mxu2 %v977_v47 }
 0x230   :  { %v3323_v4 = vpop.f32.mrf.mxu1 }
 0x231   :  { %1462 = vmatmul.f32.gmra.mxu0 %v975_v33 }
 0x232   :  { %v3325_v56 = vpop.f32.mrf.mxu2 }
 0x233   :  { %v3327_v25 = vpop.f32.mrf.mxu3 }
 0x238   :  { %v3338_v57 = vpop.f32.mrf.mxu1 }
 0x239   :  { %1465 = vmatmul.f32.gmra.mxu0 %v976_v38  ;;  %v1844_v38 = vld [vmem:[%s4263_s7 + $0xe0] sm:$0xff] }
 0x23a   :  { %v3340_v32 = vpop.f32.mrf.mxu2  ;;  %1924 = vmatpush.msra.mxu2 %v1844_v38 }
 0x23b   :  { %v3342_v58 = vpop.f32.mrf.mxu3 }
 0x23c   :  { %1925 = vmatpush.msra.mxu2 %v1843_v42 }
 0x23e   :  { %v914_v60 = vpop.f32.mrf.mxu0 }
 0x23f   :  { %v915_v61 = vadd.f32 %v3267_v59, %v914_v60  ;;  %v1058_v60 = vld [vmem:[%s4262_s6] sm:$0xf] }
 0x240   :  { %v3345_v37 = vpop.f32.mrf.mxu1  ;;  %v3440_v2 = vperm.slane %v1058_v60, 0  ;;  %v3444_v10 = vperm.slane %v1058_v60, 2  ;;  %v3450_v11 = vperm.slane %v1058_v60, 1 }
 0x241   :  { %v978_v39 = vmax.f32 %v915_v61, 0.0  ;;  %1468 = vmatmul.f32.gmra.mxu0 %v977_v47 }
 0x242   :  { %v3347_v21 = vpop.f32.mrf.mxu2  ;;  %v1315_v27 = vadd.f32 %v3342_v58, %v3444_v10  ;;  %v1092_v9 = vadd.f32 %v3345_v37, %v3440_v2  ;;  %v985_v58 = vmax.f32 %v936_v23, 0.0  ;;  %v3479_v37 = vperm.slane %v1058_v60, 3 }
 0x243   :  { %1132 = vmatmul.f32.gmra.mxu1 %v978_v39  ;;  %1245 = vmatmul.f32.gmra.mxu2 %v978_v39  ;;  %v3349_v40 = vpop.f32.mrf.mxu3  ;;  %v1202_v20 = vadd.f32 %v3347_v21, %v3450_v11  ;;  %v3483_v21 = vmax.f32 %v939_v63, 0.0  ;;  %v1199_v36 = vadd.f32 %v3340_v32, %v3450_v11 }
 0x244   :  { %1358 = vmatmul.f32.gmra.mxu3 %v978_v39 }
 0x245   :  { %v1525_v60 = vmax.f32 %v1202_v20, 0.0 }
 0x246   :  { %v3352_v28 = vpop.f32.mrf.mxu0 }
 0x248   :  { %v3363_v5 = vpop.f32.mrf.mxu1 }
 0x249   :  { %1471 = vmatmul.f32.gmra.mxu0 %v978_v39  ;;  %v1095_v32 = vadd.f32 %v3363_v5, %v3440_v2  ;;  %v3509_v5 = vadd.f32 %v3267_v59, %v3325_v56 }
 0x24a   :  { %v3365_v6 = vpop.f32.mrf.mxu2 }
 0x24b   :  { %1135 = vmatmul.f32.gmra.mxu1 %v979_v1  ;;  %1248 = vmatmul.f32.gmra.mxu2 %v979_v1  ;;  %v3367_v7 = vpop.f32.mrf.mxu3  ;;  %v1532_v0 = vmax.f32 %v1095_v32, 0.0 }
 0x24c   :  { %1361 = vmatmul.f32.gmra.mxu3 %v979_v1  ;;  %v1321_v42 = vadd.f32 %v3367_v7, %v3444_v10 }
 0x24e   :  { %v3371_v50 = vpop.f32.mrf.mxu0 }
 0x24f   :  { %v1428_v44 = vadd.f32 %v3371_v50, %v3479_v37 }
 0x250   :  { %v3373_v15 = vpop.f32.mrf.mxu1 }
 0x251   :  { %1474 = vmatmul.f32.gmra.mxu0 %v979_v1  ;;  %v1089_v1 = vadd.f32 %v3338_v57, %v3440_v2  ;;  %v1086_v57 = vadd.f32 %v3323_v4, %v3440_v2  ;;  %v1318_v4 = vadd.f32 %v3349_v40, %v3444_v10  ;;  %v1526_v40 = vmax.f32 %v1315_v27, 0.0 }
 0x252   :  { %v3375_v16 = vpop.f32.mrf.mxu2  ;;  %v1205_v27 = vadd.f32 %v3365_v6, %v3450_v11  ;;  %v1527_v20 = vmax.f32 %v1428_v44, 0.0 }
 0x253   :  { %1138 = vmatmul.f32.gmra.mxu1 %v980_v12  ;;  %1251 = vmatmul.f32.gmra.mxu2 %v980_v12  ;;  %v3377_v14 = vpop.f32.mrf.mxu3  ;;  %v1520_v53 = vmax.f32 %v1086_v57, 0.0  ;;  %v1530_v63 = vmax.f32 %v1318_v4, 0.0 }
 0x254   :  { %1364 = vmatmul.f32.gmra.mxu3 %v980_v12  ;;  %v1529_v56 = vmax.f32 %v1205_v27, 0.0  ;;  %v1324_v44 = vadd.f32 %v3377_v14, %v3444_v10 }
 0x256   :  { %v3381_v17 = vpop.f32.mrf.mxu0  ;;  %v1538_v27 = vmax.f32 %v1324_v44, 0.0 }
 0x257   :  { %v1431_v13 = vadd.f32 %v3381_v17, %v3479_v37 }
 0x258   :  { %v3392_v48 = vpop.f32.mrf.mxu1 }
 0x259   :  { %1477 = vmatmul.f32.gmra.mxu0 %v980_v12 }
 0x25a   :  { %v3394_v19 = vpop.f32.mrf.mxu2 }
 0x25b   :  { %1141 = vmatmul.f32.gmra.mxu1 %v981_v41  ;;  %1254 = vmatmul.f32.gmra.mxu2 %v981_v41  ;;  %v3396_v54 = vpop.f32.mrf.mxu3  ;;  %v1211_v14 = vadd.f32 %v3394_v19, %v3450_v11 }
 0x25c   :  { %1367 = vmatmul.f32.gmra.mxu3 %v981_v41 }
 0x25e   :  { %v3400_v24 = vpop.f32.mrf.mxu0 }
 0x260   :  { %v3402_v29 = vpop.f32.mrf.mxu1 }
 0x261   :  { %1480 = vmatmul.f32.gmra.mxu0 %v981_v41  ;;  %v1312_v41 = vadd.f32 %v3327_v25, %v3444_v10  ;;  %v3491_v25 = vmax.f32 %v945_v18, 0.0  ;;  %v1521_v18 = vmax.f32 %v1199_v36, 0.0 }
 0x262   :  { %v3404_v33 = vpop.f32.mrf.mxu2 }
 0x263   :  { %1144 = vmatmul.f32.gmra.mxu1 %v982_v26  ;;  %1257 = vmatmul.f32.gmra.mxu2 %v982_v26  ;;  %v3406_v35 = vpop.f32.mrf.mxu3  ;;  %v1522_v23 = vmax.f32 %v1312_v41, 0.0  ;;  %v1669_v17 = vmax.f32 %v1521_v18, %v1525_v60  ;;  %v1098_v41 = vadd.f32 %v3373_v15, %v3440_v2 }
 0x264   :  { %1370 = vmatmul.f32.gmra.mxu3 %v982_v26 }
 0x265   :  { %v1536_v32 = vmax.f32 %v1098_v41, 0.0  ;;  %v1858_v41 = vld [vmem:[%s4263_s7 + $0x150] sm:$0xff] }
 0x266   :  { %v3410_v51 = vpop.f32.mrf.mxu0  ;;  %1946 = vmatpush.msra.mxu3 %v1858_v41 }
 0x267   :  { %v1437_v7 = vadd.f32 %v3410_v51, %v3479_v37 }
 0x268   :  { %v3421_v47 = vpop.f32.mrf.mxu1 }
 0x269   :  { %1483 = vmatmul.f32.gmra.mxu0 %v982_v26  ;;  %v1524_v26 = vmax.f32 %v1089_v1, 0.0  ;;  %v1425_v1 = vadd.f32 %v3352_v28, %v3479_v37  ;;  %v1434_v28 = vadd.f32 %v3400_v24, %v3479_v37  ;;  %v1208_v24 = vadd.f32 %v3375_v16, %v3450_v11 }
 0x26a   :  { %v3423_v22 = vpop.f32.mrf.mxu2 }
 0x26b   :  { %1147 = vmatmul.f32.gmra.mxu1 %v983_v3  ;;  %1260 = vmatmul.f32.gmra.mxu2 %v983_v3  ;;  %v3425_v49 = vpop.f32.mrf.mxu3  ;;  %v1648_v50 = vmax.f32 %v1520_v53, %v1524_v26  ;;  %v1523_v4 = vmax.f32 %v1425_v1, 0.0  ;;  %v1531_v26 = vmax.f32 %v1431_v13, 0.0  ;;  %v1535_v60 = vmax.f32 %v1434_v28, 0.0  ;;  %v1842_v28 = vld [vmem:[%s4263_s7 + $0xd0] sm:$0xff] }
 0x26c   :  { %1373 = vmatmul.f32.gmra.mxu3 %v983_v3  ;;  %v1670_v13 = vmax.f32 %v1669_v17, %v1529_v56  ;;  %v1533_v18 = vmax.f32 %v1208_v24, 0.0  ;;  %1926 = vmatpush.msra.mxu2 %v1842_v28  ;;  %v1826_v17 = vld [vmem:[%s4263_s7 + $0x50] sm:$0xff]  ;;  %v1107_v24 = vadd.f32 %v3421_v47, %v3440_v2 }
 0x26d   :  { %v1711_v15 = vmax.f32 %v1523_v4, %v1527_v20  ;;  %1906 = vmatpush.msra.mxu1 %v1826_v17 }
 0x26e   :  { %v3429_v55 = vpop.f32.mrf.mxu0  ;;  %v1671_v56 = vmax.f32 %v1670_v13, %v1533_v18 }
 0x26f   :  { %v1440_v51 = vadd.f32 %v3429_v55, %v3479_v37  ;;  %v1104_v55 = vadd.f32 %v3402_v29, %v3440_v2  ;;  %v1537_v29 = vmax.f32 %v1211_v14, 0.0 }
 0x270   :  { %v3434_v61 = vpop.f32.mrf.mxu1 }
 0x271   :  { %1486 = vmatmul.f32.gmra.mxu0 %v983_v3  ;;  %v1543_v20 = vmax.f32 %v1440_v51, 0.0  ;;  %v1110_v47 = vadd.f32 %v3434_v61, %v3440_v2 }
 0x272   :  { %v3436_v39 = vpop.f32.mrf.mxu2 }
 0x273   :  { %1150 = vmatmul.f32.gmra.mxu1 %v984_v34  ;;  %1263 = vmatmul.f32.gmra.mxu2 %v984_v34  ;;  %v3438_v62 = vpop.f32.mrf.mxu3 }
 0x274   :  { %1376 = vmatmul.f32.gmra.mxu3 %v984_v34 }
 0x276   :  { %v3452_v12 = vpop.f32.mrf.mxu0 }
 0x277   :  { %v1443_v1 = vadd.f32 %v3452_v12, %v3479_v37  ;;  %v1214_v12 = vadd.f32 %v3404_v33, %v3450_v11 }
 0x278   :  { %v3481_v8 = vpop.f32.mrf.mxu1 }
 0x279   :  { %1489 = vmatmul.f32.gmra.mxu0 %v984_v34  ;;  %v1528_v34 = vmax.f32 %v1092_v9, 0.0  ;;  %v1690_v9 = vmax.f32 %v1522_v23, %v1526_v40  ;;  %v1534_v40 = vmax.f32 %v1321_v42, 0.0  ;;  %v1327_v23 = vadd.f32 %v3396_v54, %v3444_v10 }
 0x27a   :  { %v3487_v38 = vpop.f32.mrf.mxu2  ;;  %v1547_v4 = vmax.f32 %v1443_v1, 0.0  ;;  %v1333_v1 = vadd.f32 %v3425_v49, %v3444_v10  ;;  %v1113_v13 = vadd.f32 %v3481_v8, %v3440_v2 }
 0x27b   :  { %1153 = vmatmul.f32.gmra.mxu1 %v985_v58  ;;  %1266 = vmatmul.f32.gmra.mxu2 %v985_v58  ;;  %v3495_v3 = vpop.f32.mrf.mxu3  ;;  %v1649_v45 = vmax.f32 %v1648_v50, %v1528_v34  ;;  %v1691_v6 = vmax.f32 %v1690_v9, %v1530_v63  ;;  %v1101_v34 = vadd.f32 %v3392_v48, %v3440_v2  ;;  %v1539_v63 = vmax.f32 %v1437_v7, 0.0 }
 0x27c   :  { %1379 = vmatmul.f32.gmra.mxu3 %v985_v58  ;;  %v1712_v48 = vmax.f32 %v1711_v15, %v1531_v26  ;;  %v1223_v61 = vadd.f32 %v3487_v38, %v3450_v11 }
 0x27d   :  { %v1650_v16 = vmax.f32 %v1649_v45, %v1532_v0  ;;  %v1692_v50 = vmax.f32 %v1691_v6, %v1534_v40  ;;  %v1540_v9 = vmax.f32 %v1101_v34, 0.0  ;;  %v1542_v0 = vmax.f32 %v1327_v23, 0.0 }
 0x27e   :  { %v1445_v57 = vpop.f32.mrf.mxu0  ;;  %v1713_v19 = vmax.f32 %v1712_v48, %v1535_v60  ;;  %v1330_v40 = vadd.f32 %v3406_v35, %v3444_v10  ;;  %v1217_v34 = vadd.f32 %v3423_v22, %v3450_v11  ;;  %v1541_v35 = vmax.f32 %v1214_v12, 0.0 }
 0x27f   :  { %v1446_v54 = vadd.f32 %v1445_v57, %v3479_v37  ;;  %v1651_v45 = vmax.f32 %v1650_v16, %v1536_v32  ;;  %v1544_v57 = vmax.f32 %v1104_v55, 0.0  ;;  %v1693_v33 = vmax.f32 %v1692_v50, %v1538_v27 }
 0x280   :  { %v3517_v36 = vpop.f32.mrf.mxu1  ;;  %v1714_v6 = vmax.f32 %v1713_v19, %v1539_v63  ;;  %v1672_v16 = vmax.f32 %v1671_v56, %v1537_v29  ;;  %v1220_v22 = vadd.f32 %v3436_v39, %v3450_v11  ;;  %v1546_v55 = vmax.f32 %v1330_v40, 0.0 }
 0x281   :  { %1492 = vmatmul.f32.gmra.mxu0 %v985_v58  ;;  %v1652_v15 = vmax.f32 %v1651_v45, %v1540_v9  ;;  %v1551_v51 = vmax.f32 %v1446_v54, 0.0  ;;  %v1694_v32 = vmax.f32 %v1693_v33, %v1542_v0  ;;  %v1548_v63 = vmax.f32 %v1107_v24, 0.0 }
 0x282   :  { %v3523_v53 = vpop.f32.mrf.mxu2  ;;  %v1715_v60 = vmax.f32 %v1714_v6, %v1543_v20  ;;  %v1545_v18 = vmax.f32 %v1217_v34, 0.0  ;;  %v1673_v9 = vmax.f32 %v1672_v16, %v1541_v35  ;;  %v1552_v39 = vmax.f32 %v1110_v47, 0.0 }
 0x283   :  { %1156 = vmatmul.f32.gmra.mxu1 %v3483_v21  ;;  %1269 = vmatmul.f32.gmra.mxu2 %v3483_v21  ;;  %v3531_v58 = vpop.f32.mrf.mxu3  ;;  %v1653_v14 = vmax.f32 %v1652_v15, %v1544_v57  ;;  %v1336_v19 = vadd.f32 %v3438_v62, %v3444_v10  ;;  %v1116_v20 = vadd.f32 %v3517_v36, %v3440_v2  ;;  %v1549_v49 = vmax.f32 %v1220_v22, 0.0 }
 0x284   :  { %1382 = vmatmul.f32.gmra.mxu3 %v3483_v21  ;;  %v1716_v23 = vmax.f32 %v1715_v60, %v1547_v4  ;;  %v1226_v8 = vadd.f32 %v3523_v53, %v3450_v11  ;;  %v1550_v29 = vmax.f32 %v1333_v1, 0.0  ;;  %v1556_v0 = vmax.f32 %v1113_v13, 0.0 }
 0x285   :  { %v1654_v38 = vmax.f32 %v1653_v14, %v1548_v63  ;;  %v1674_v41 = vmax.f32 %v1673_v9, %v1545_v18  ;;  %v1553_v62 = vmax.f32 %v1223_v61, 0.0  ;;  %v1695_v6 = vmax.f32 %v1694_v32, %v1546_v55 }
 0x286   :  { %v1448_v42 = vpop.f32.mrf.mxu0  ;;  %v1717_v27 = vmax.f32 %v1716_v23, %v1551_v51  ;;  %v1557_v33 = vmax.f32 %v1226_v8, 0.0  ;;  %v989_v35 = vmax.f32 %v3509_v5, 0.0  ;;  %v1342_v14 = vadd.f32 %v3531_v58, %v3444_v10 }
 0x287   :  { %v1449_v26 = vadd.f32 %v1448_v42, %v3479_v37  ;;  %v1655_v4 = vmax.f32 %v1654_v38, %v1552_v39  ;;  %v1675_v56 = vmax.f32 %v1674_v41, %v1549_v49  ;;  %v1696_v60 = vmax.f32 %v1695_v6, %v1550_v29 }
 0x288   :  { %v1118_v7 = vpop.f32.mrf.mxu1  ;;  %v1562_v9 = vmax.f32 %v1342_v14, 0.0 }
 0x289   :  { %1495 = vmatmul.f32.gmra.mxu0 %v3483_v21  ;;  %v1555_v48 = vmax.f32 %v1449_v26, 0.0  ;;  %v1119_v12 = vadd.f32 %v1118_v7, %v3440_v2  ;;  %v1560_v26 = vmax.f32 %v1116_v20, 0.0  ;;  %v1554_v7 = vmax.f32 %v1336_v19, 0.0 }
 0x28a   :  { %v1228_v44 = vpop.f32.mrf.mxu2  ;;  %v1656_v24 = vmax.f32 %v1655_v4, %v1556_v0  ;;  %v1676_v51 = vmax.f32 %v1675_v56, %v1553_v62  ;;  %v951_v20 = vadd.f32 %v3267_v59, %v3301_v31  ;;  %v1841_v56 = vld [vmem:[%s4263_s7 + $0xc8] sm:$0xff] }
 0x28b   :  { %1159 = vmatmul.f32.gmra.mxu1 %v3489_v30  ;;  %1272 = vmatmul.f32.gmra.mxu2 %v3489_v30  ;;  %v3564_v21 = vpop.f32.mrf.mxu3  ;;  %v1718_v54 = vmax.f32 %v1717_v27, %v1555_v48  ;;  %v1229_v57 = vadd.f32 %v1228_v44, %v3450_v11  ;;  %v1339_v44 = vadd.f32 %v3495_v3, %v3444_v10  ;;  %v1564_v15 = vmax.f32 %v1119_v12, 0.0 }
 0x28c   :  { %1385 = vmatmul.f32.gmra.mxu3 %v3489_v30  ;;  %v1657_v47 = vmax.f32 %v1656_v24, %v1560_v26  ;;  %v1697_v23 = vmax.f32 %v1696_v60, %v1554_v7  ;;  %v1677_v48 = vmax.f32 %v1676_v51, %v1557_v33  ;;  %v990_v41 = vmax.f32 %v951_v20, 0.0  ;;  %v1825_v7 = vld [vmem:[%s4263_s7 + $0x48] sm:$0xff]  ;;  %1927 = vmatpush.msra.mxu2 %v1841_v56  ;;  %v1854_v56 = vld [vmem:[%s4263_s7 + $0x130] sm:$0xff] }
 0x28d   :  { %v1561_v16 = vmax.f32 %v1229_v57, 0.0  ;;  %v1558_v3 = vmax.f32 %v1339_v44, 0.0  ;;  %v1857_v33 = vld [vmem:[%s4263_s7 + $0x148] sm:$0xff]  ;;  %1907 = vmatpush.msra.mxu1 %v1825_v7 }
 0x28e   :  { %v1451_v50 = vpop.f32.mrf.mxu0  ;;  %v1658_v13 = vmax.f32 %v1657_v47, %v1564_v15  ;;  %v954_v15 = vadd.f32 %v3267_v59, %v3308_v43  ;;  %1947 = vmatpush.msra.mxu3 %v1857_v33 }
 0x28f   :  { %v1452_v42 = vadd.f32 %v1451_v50, %v3479_v37  ;;  %v1345_v50 = vadd.f32 %v3564_v21, %v3444_v10  ;;  %v1678_v61 = vmax.f32 %v1677_v48, %v1561_v16  ;;  %v1698_v8 = vmax.f32 %v1697_v23, %v1558_v3 }
 0x290   :  { %v1121_v45 = vpop.f32.mrf.mxu1 }
 0x291   :  { %v1559_v28 = vmax.f32 %v1452_v42, 0.0  ;;  %1498 = vmatmul.f32.gmra.mxu0 %v3489_v30  ;;  %v1122_v30 = vadd.f32 %v1121_v45, %v3440_v2  ;;  %v1699_v12 = vmax.f32 %v1698_v8, %v1562_v9 }
 0x292   :  { %v1231_v17 = vpop.f32.mrf.mxu2 }
 0x293   :  { %v1719_v36 = vmax.f32 %v1718_v54, %v1559_v28  ;;  %1162 = vmatmul.f32.gmra.mxu1 %v3491_v25  ;;  %1275 = vmatmul.f32.gmra.mxu2 %v3491_v25  ;;  %v1347_v53 = vpop.f32.mrf.mxu3  ;;  %v1232_v40 = vadd.f32 %v1231_v17, %v3450_v11  ;;  %v1568_v22 = vmax.f32 %v1122_v30, 0.0  ;;  %v1566_v54 = vmax.f32 %v1345_v50, 0.0  ;;  %v2479_v50 = vld [vmem:[%s4260_s4] ss:$0 sm:$0xff] }
 0x294   :  { %1388 = vmatmul.f32.gmra.mxu3 %v3491_v25  ;;  %v1348_v19 = vadd.f32 %v1347_v53, %v3444_v10 }
 0x295   :  { %v1565_v55 = vmax.f32 %v1232_v40, 0.0  ;;  %v1659_v39 = vmax.f32 %v1658_v13, %v1568_v22  ;;  %v991_v22 = vmax.f32 %v954_v15, 0.0 }
 0x296   :  { %v1454_v34 = vpop.f32.mrf.mxu0  ;;  %v1570_v17 = vmax.f32 %v1348_v19, 0.0  ;;  %v1824_v19 = vld [vmem:[%s4263_s7 + $0x40] sm:$0xff] }
 0x297   :  { %v1455_v32 = vadd.f32 %v1454_v34, %v3479_v37  ;;  %v1679_v21 = vmax.f32 %v1678_v61, %v1565_v55  ;;  %1908 = vmatpush.msra.mxu1 %v1824_v19  ;;  %v1821_v19 = vld [vmem:[%s4263_s7 + $0x28] sm:$0xff] }
 0x298   :  { %v1124_v1 = vpop.f32.mrf.mxu1 }
 0x299   :  { %v1563_v63 = vmax.f32 %v1455_v32, 0.0  ;;  %1501 = vmatmul.f32.gmra.mxu0 %v3491_v25  ;;  %v1125_v18 = vadd.f32 %v1124_v1, %v3440_v2 }
 0x29a   :  { %v1234_v5 = vpop.f32.mrf.mxu2 }
 0x29b   :  { %v1720_v27 = vmax.f32 %v1719_v36, %v1563_v63  ;;  %v1235_v58 = vadd.f32 %v1234_v5, %v3450_v11  ;;  %1165 = vmatmul.f32.gmra.mxu1 %v989_v35  ;;  %1278 = vmatmul.f32.gmra.mxu2 %v989_v35  ;;  %v1350_v42 = vpop.f32.mrf.mxu3  ;;  %v1572_v25 = vmax.f32 %v1125_v18, 0.0  ;;  %v1700_v36 = vmax.f32 %v1699_v12, %v1566_v54 }
 0x29c   :  { %1391 = vmatmul.f32.gmra.mxu3 %v989_v35  ;;  %v1351_v45 = vadd.f32 %v1350_v42, %v3444_v10  ;;  %v957_v18 = vadd.f32 %v2479_v50, %v3315_v46  ;;  %v1856_v46 = vld [vmem:[%s4263_s7 + $0x140] sm:$0xff] }
 0x29d   :  { %v1569_v49 = vmax.f32 %v1235_v58, 0.0  ;;  %v1660_v28 = vmax.f32 %v1659_v39, %v1572_v25  ;;  %v1701_v40 = vmax.f32 %v1700_v36, %v1570_v17  ;;  %v1840_v39 = vld [vmem:[%s4263_s7 + $0xc0] sm:$0xff]  ;;  %1948 = vmatpush.msra.mxu3 %v1856_v46  ;;  %v1853_v46 = vld [vmem:[%s4263_s7 + $0x128] sm:$0xff] }
 0x29e   :  { %v1457_v38 = vpop.f32.mrf.mxu0  ;;  %v1574_v53 = vmax.f32 %v1351_v45, 0.0  ;;  %1928 = vmatpush.msra.mxu2 %v1840_v39  ;;  %v992_v20 = vmax.f32 %v957_v18, 0.0  ;;  %v1837_v39 = vld [vmem:[%s4263_s7 + $0xa8] sm:$0xff] }
 0x29f   :  { %v1680_v29 = vmax.f32 %v1679_v21, %v1569_v49  ;;  %v1458_v0 = vadd.f32 %v1457_v38, %v3479_v37  ;;  %v1839_v38 = vld [vmem:[%s4263_s7 + $0xb8] sm:$0xff] }
 0x2a0   :  { %v1127_v57 = vpop.f32.mrf.mxu1  ;;  %v1702_v60 = vmax.f32 %v1701_v40, %v1574_v53  ;;  %1929 = vmatpush.msra.mxu2 %v1839_v38 }
 0x2a1   :  { %v1567_v62 = vmax.f32 %v1458_v0, 0.0  ;;  %1504 = vmatmul.f32.gmra.mxu0 %v989_v35  ;;  %v1128_v31 = vadd.f32 %v1127_v57, %v3440_v2  ;;  %v1855_v0 = vld [vmem:[%s4263_s7 + $0x138] sm:$0xff] }
 0x2a2   :  { %v1237_v6 = vpop.f32.mrf.mxu2  ;;  %1949 = vmatpush.msra.mxu3 %v1855_v0 }
 0x2a3   :  { %v1721_v4 = vmax.f32 %v1720_v27, %v1567_v62  ;;  %v1238_v26 = vadd.f32 %v1237_v6, %v3450_v11  ;;  %1168 = vmatmul.f32.gmra.mxu1 %v990_v41  ;;  %1281 = vmatmul.f32.gmra.mxu2 %v990_v41  ;;  %v1353_v30 = vpop.f32.mrf.mxu3  ;;  %v1576_v24 = vmax.f32 %v1128_v31, 0.0 }
 0x2a4   :  { %v1354_v44 = vadd.f32 %v1353_v30, %v3444_v10  ;;  %1394 = vmatmul.f32.gmra.mxu3 %v990_v41  ;;  %v1822_v30 = vld [vmem:[%s4263_s7 + $0x30] sm:$0xff] }
 0x2a5   :  { %v1573_v34 = vmax.f32 %v1238_v26, 0.0  ;;  %v1661_v51 = vmax.f32 %v1660_v28, %v1576_v24  ;;  %v960_v28 = vadd.f32 %v2479_v50, %v3321_v52  ;;  %v1838_v26 = vld [vmem:[%s4263_s7 + $0xb0] sm:$0xff]  ;;  %1950 = vmatpush.msra.mxu3 %v1854_v56 }
 0x2a6   :  { %v1578_v16 = vmax.f32 %v1354_v44, 0.0  ;;  %v1460_v32 = vpop.f32.mrf.mxu0  ;;  %1930 = vmatpush.msra.mxu2 %v1838_v26 }
 0x2a7   :  { %v1681_v35 = vmax.f32 %v1680_v29, %v1573_v34  ;;  %v1461_v47 = vadd.f32 %v1460_v32, %v3479_v37  ;;  %v1823_v29 = vld [vmem:[%s4263_s7 + $0x38] sm:$0xff]  ;;  %1951 = vmatpush.msra.mxu3 %v1853_v46 }
 0x2a8   :  { %v1703_v14 = vmax.f32 %v1702_v60, %v1578_v16  ;;  %v1130_v48 = vpop.f32.mrf.mxu1  ;;  %1909 = vmatpush.msra.mxu1 %v1823_v29  ;;  %1931 = vmatpush.msra.mxu2 %v1837_v39  ;;  %v1819_v39 = vld [vmem:[%s4263_s7 + $0x18] sm:$0xff] }
 0x2a9   :  { %v1571_v23 = vmax.f32 %v1461_v47, 0.0  ;;  %1507 = vmatmul.f32.gmra.mxu0 %v990_v41  ;;  %v1131_v55 = vadd.f32 %v1130_v48, %v3440_v2  ;;  %v993_v41 = vmax.f32 %v960_v28, 0.0 }
 0x2aa   :  { %v1240_v63 = vpop.f32.mrf.mxu2  ;;  %1910 = vmatpush.msra.mxu1 %v1822_v30 }
 0x2ab   :  { %v1722_v1 = vmax.f32 %v1721_v4, %v1571_v23  ;;  %v1241_v59 = vadd.f32 %v1240_v63, %v3450_v11  ;;  %1171 = vmatmul.f32.gmra.mxu1 %v991_v22  ;;  %1284 = vmatmul.f32.gmra.mxu2 %v991_v22  ;;  %v1356_v43 = vpop.f32.mrf.mxu3  ;;  %v1580_v3 = vmax.f32 %v1131_v55, 0.0 }
 0x2ac   :  { %v1357_v13 = vadd.f32 %v1356_v43, %v3444_v10  ;;  %1397 = vmatmul.f32.gmra.mxu3 %v991_v22  ;;  %1911 = vmatpush.msra.mxu1 %v1821_v19  ;;  %v1851_v19 = vld [vmem:[%s4263_s7 + $0x118] sm:$0xff] }
 0x2ad   :  { %v1577_v5 = vmax.f32 %v1241_v59, 0.0  ;;  %v3630_v61 = vmax.f32 %v1661_v51, %v1580_v3 }
 0x2ae   :  { %v1582_v27 = vmax.f32 %v1357_v13, 0.0  ;;  %v1463_v58 = vpop.f32.mrf.mxu0 }
 0x2af   :  { %v1682_v42 = vmax.f32 %v1681_v35, %v1577_v5  ;;  %v1464_v9 = vadd.f32 %v1463_v58, %v3479_v37 }
 0x2b0   :  { %v3642_v25 = vmax.f32 %v1703_v14, %v1582_v27 }
 0x2b1   :  { %v1575_v21 = vmax.f32 %v1464_v9, 0.0  ;;  %1510 = vmatmul.f32.gmra.mxu0 %v991_v22 }
 0x2b2   :  { %v1243_v49 = vpop.f32.mrf.mxu2 }
 0x2b3   :  { %v1723_v8 = vmax.f32 %v1722_v1, %v1575_v21  ;;  %v1244_v54 = vadd.f32 %v1243_v49, %v3450_v11  ;;  %1174 = vmatmul.f32.gmra.mxu1 %v992_v20  ;;  %1287 = vmatmul.f32.gmra.mxu2 %v992_v20 }
 0x2b4   :  { %1400 = vmatmul.f32.gmra.mxu3 %v992_v20 }
 0x2b5   :  { %v1581_v45 = vmax.f32 %v1244_v54, 0.0 }
 0x2b6   :  { %v1466_v12 = vpop.f32.mrf.mxu0 }
 0x2b7   :  { %v3655_v17 = vmax.f32 %v1682_v42, %v1581_v45  ;;  %v1467_v52 = vadd.f32 %v1466_v12, %v3479_v37 }
 0x2b9   :  { %v1579_v62 = vmax.f32 %v1467_v52, 0.0  ;;  %1513 = vmatmul.f32.gmra.mxu0 %v992_v20 }
 0x2bb   :  { %v1724_v57 = vmax.f32 %v1723_v8, %v1579_v62  ;;  %1177 = vmatmul.f32.gmra.mxu1 %v993_v41  ;;  %1290 = vmatmul.f32.gmra.mxu2 %v993_v41 }
 0x2bc   :  { %1403 = vmatmul.f32.gmra.mxu3 %v993_v41 }
 0x2be   :  { %v1469_v36 = vpop.f32.mrf.mxu0 }
 0x2bf   :  { %v1470_v53 = vadd.f32 %v1469_v36, %v3479_v37 }
 0x2c0   :  { %v1133_v31 = vpop.f32.mrf.mxu1 }
 0x2c1   :  { %v1583_v6 = vmax.f32 %v1470_v53, 0.0  ;;  %1516 = vmatmul.f32.gmra.mxu0 %v993_v41  ;;  %v1134_v40 = vadd.f32 %v1133_v31, %v3440_v2 }
 0x2c3   :  { %v3659_v4 = vmax.f32 %v1724_v57, %v1583_v6  ;;  %v1584_v34 = vmax.f32 %v1134_v40, 0.0 }
 0x2c6   :  { %v1246_v7 = vpop.f32.mrf.mxu2  ;;  %v1472_v33 = vpop.f32.mrf.mxu0 }
 0x2c7   :  { %v1359_v24 = vpop.f32.mrf.mxu3  ;;  %v1247_v51 = vadd.f32 %v1246_v7, %v3450_v11  ;;  %v1473_v16 = vadd.f32 %v1472_v33, %v3479_v37 }
 0x2c8   :  { %v1136_v44 = vpop.f32.mrf.mxu1  ;;  %v1360_v35 = vadd.f32 %v1359_v24, %v3444_v10 }
 0x2c9   :  { %v1137_v15 = vadd.f32 %v1136_v44, %v3440_v2  ;;  %v1585_v55 = vmax.f32 %v1247_v51, 0.0  ;;  %v1587_v59 = vmax.f32 %v1473_v16, 0.0 }
 0x2ca   :  { %v1586_v50 = vmax.f32 %v1360_v35, 0.0  ;;  %v1820_v35 = vld [vmem:[%s4263_s7 + $0x20] sm:$0xff] }
 0x2cb   :  { %v1588_v60 = vmax.f32 %v1137_v15, 0.0  ;;  %1912 = vmatpush.msra.mxu1 %v1820_v35  ;;  %v1875_v35 = vld [vmem:[%s4263_s7 + $0x1d8] sm:$0xff] }
 0x2cd   :  { %v1732_v32 = vmax.f32 %v1584_v34, %v1588_v60  ;;  %1913 = vmatpush.msra.mxu1 %v1819_v39 }
 0x2ce   :  { %v1249_v47 = vpop.f32.mrf.mxu2  ;;  %v1475_v14 = vpop.f32.mrf.mxu0 }
 0x2cf   :  { %v1250_v22 = vadd.f32 %v1249_v47, %v3450_v11  ;;  %v1362_v23 = vpop.f32.mrf.mxu3  ;;  %v1476_v48 = vadd.f32 %v1475_v14, %v3479_v37  ;;  %v1852_v47 = vld [vmem:[%s4263_s7 + $0x120] sm:$0xff] }
 0x2d0   :  { %v1363_v63 = vadd.f32 %v1362_v23, %v3444_v10  ;;  %v1139_v1 = vpop.f32.mrf.mxu1  ;;  %1952 = vmatpush.msra.mxu3 %v1852_v47 }
 0x2d1   :  { %v1589_v43 = vmax.f32 %v1250_v22, 0.0  ;;  %v1591_v3 = vmax.f32 %v1476_v48, 0.0  ;;  %v1140_v13 = vadd.f32 %v1139_v1, %v3440_v2 }
 0x2d2   :  { %v1590_v18 = vmax.f32 %v1363_v63, 0.0  ;;  %1953 = vmatpush.msra.mxu3 %v1851_v19 }
 0x2d3   :  { %v1753_v5 = vmax.f32 %v1585_v55, %v1589_v43  ;;  %v1795_v27 = vmax.f32 %v1587_v59, %v1591_v3  ;;  %v1592_v58 = vmax.f32 %v1140_v13, 0.0 }
 0x2d4   :  { %v1774_v42 = vmax.f32 %v1586_v50, %v1590_v18 }
 0x2d5   :  { %v1733_v9 = vmax.f32 %v1732_v32, %v1592_v58  ;;  %v1836_v32 = vld [vmem:[%s4263_s7 + $0xa0] sm:$0xff] }
 0x2d6   :  { %v1252_v20 = vpop.f32.mrf.mxu2  ;;  %v1478_v21 = vpop.f32.mrf.mxu0  ;;  %1932 = vmatpush.msra.mxu2 %v1836_v32 }
 0x2d7   :  { %v1253_v49 = vadd.f32 %v1252_v20, %v3450_v11  ;;  %v1365_v8 = vpop.f32.mrf.mxu3  ;;  %v1479_v54 = vadd.f32 %v1478_v21, %v3479_v37 }
 0x2d8   :  { %v1366_v28 = vadd.f32 %v1365_v8, %v3444_v10  ;;  %v1142_v45 = vpop.f32.mrf.mxu1 }
 0x2d9   :  { %v1593_v38 = vmax.f32 %v1253_v49, 0.0  ;;  %v1595_v29 = vmax.f32 %v1479_v54, 0.0  ;;  %v1143_v0 = vadd.f32 %v1142_v45, %v3440_v2 }
 0x2da   :  { %v1594_v12 = vmax.f32 %v1366_v28, 0.0 }
 0x2db   :  { %v1754_v52 = vmax.f32 %v1753_v5, %v1593_v38  ;;  %v1796_v41 = vmax.f32 %v1795_v27, %v1595_v29  ;;  %v1596_v62 = vmax.f32 %v1143_v0, 0.0  ;;  %v1834_v38 = vld [vmem:[%s4263_s7 + $0x90] sm:$0xff] }
 0x2dc   :  { %v1775_v57 = vmax.f32 %v1774_v42, %v1594_v12  ;;  %v1818_v29 = vld [vmem:[%s4263_s7 + $0x10] sm:$0xff] }
 0x2dd   :  { %v1734_v36 = vmax.f32 %v1733_v9, %v1596_v62  ;;  %v1835_v9 = vld [vmem:[%s4263_s7 + $0x98] sm:$0xff]  ;;  %v1850_v0 = vld [vmem:[%s4263_s7 + $0x110] sm:$0xff]  ;;  %1914 = vmatpush.msra.mxu1 %v1818_v29 }
 0x2de   :  { %v1255_v53 = vpop.f32.mrf.mxu2  ;;  %v1481_v31 = vpop.f32.mrf.mxu0  ;;  %1933 = vmatpush.msra.mxu2 %v1835_v9  ;;  %1954 = vmatpush.msra.mxu3 %v1850_v0  ;;  %v1684_v0 = vrot.slane %v3655_v17, 4 }
 0x2df   :  { %v1256_v6 = vadd.f32 %v1255_v53, %v3450_v11  ;;  %v1368_v26 = vpop.f32.mrf.mxu3  ;;  %v1482_v30 = vadd.f32 %v1481_v31, %v3479_v37 }
 0x2e0   :  { %v1369_v56 = vadd.f32 %v1368_v26, %v3444_v10  ;;  %v1145_v7 = vpop.f32.mrf.mxu1  ;;  %1934 = vmatpush.msra.mxu2 %v1834_v38  ;;  %v1816_v26 = vld [vmem:[%s4263_s7] sm:$0xff] }
 0x2e1   :  { %v1597_v33 = vmax.f32 %v1256_v6, 0.0  ;;  %v1599_v40 = vmax.f32 %v1482_v30, 0.0  ;;  %v1146_v24 = vadd.f32 %v1145_v7, %v3440_v2  ;;  %v1817_v6 = vld [vmem:[%s4263_s7 + $0x8] sm:$0xff]  ;;  %v1879_v7 = vld [vmem:[%s4263_s7 + $0x1f8] sm:$0xff] }
 0x2e2   :  { %v1598_v44 = vmax.f32 %v1369_v56, 0.0  ;;  %1915 = vmatpush.msra.mxu1 %v1817_v6  ;;  %v1833_v30 = vld [vmem:[%s4263_s7 + $0x88] sm:$0xff]  ;;  %v1726_v6 = vrot.slane %v3659_v4, 4 }
 0x2e3   :  { %v1755_v15 = vmax.f32 %v1754_v52, %v1597_v33  ;;  %v1797_v34 = vmax.f32 %v1796_v41, %v1599_v40  ;;  %v1600_v60 = vmax.f32 %v1146_v24, 0.0  ;;  %v1849_v56 = vld [vmem:[%s4263_s7 + $0x108] sm:$0xff]  ;;  %1935 = vmatpush.msra.mxu2 %v1833_v30 }
 0x2e4   :  { %v1776_v51 = vmax.f32 %v1775_v57, %v1598_v44  ;;  %1916 = vmatpush.msra.mxu1 %v1816_v26  ;;  %1955 = vmatpush.msra.mxu3 %v1849_v56  ;;  %v1878_v44 = vld [vmem:[%s4263_s7 + $0x1f0] sm:$0xff] }
 0x2e5   :  { %v3696_v16 = vmax.f32 %v1734_v36, %v1600_v60  ;;  %v1663_v60 = vrot.slane %v3630_v61, 4 }
 0x2e6   :  { %v1258_v14 = vpop.f32.mrf.mxu2  ;;  %v1484_v22 = vpop.f32.mrf.mxu0  ;;  %1961 = vmatpush.msrb.mxu1 %v1879_v7 }
 0x2e7   :  { %v1259_v23 = vadd.f32 %v1258_v14, %v3450_v11  ;;  %v1371_v48 = vpop.f32.mrf.mxu3  ;;  %v1485_v55 = vadd.f32 %v1484_v22, %v3479_v37 }
 0x2e8   :  { %v1372_v63 = vadd.f32 %v1371_v48, %v3444_v10  ;;  %v1148_v1 = vpop.f32.mrf.mxu1  ;;  %1962 = vmatpush.msrb.mxu1 %v1878_v44  ;;  %v3802_v48 = vmax.f32 %v3630_v61, %v1663_v60 }
 0x2e9   :  { %v1601_v59 = vmax.f32 %v1259_v23, 0.0  ;;  %v1603_v43 = vmax.f32 %v1485_v55, 0.0  ;;  %v1149_v32 = vadd.f32 %v1148_v1, %v3440_v2  ;;  %v1705_v55 = vrot.slane %v3642_v25, 4 }
 0x2ea   :  { %v1602_v3 = vmax.f32 %v1372_v63, 0.0 }
 0x2eb   :  { %v3710_v13 = vmax.f32 %v1755_v15, %v1601_v59  ;;  %v3712_v50 = vmax.f32 %v1797_v34, %v1603_v43  ;;  %v1877_v34 = vld [vmem:[%s4263_s7 + $0x1e8] sm:$0xff]  ;;  %v1874_v59 = vld [vmem:[%s4263_s7 + $0x1d0] sm:$0xff] }
 0x2ec   :  { %v3714_v18 = vmax.f32 %v1776_v51, %v1602_v3  ;;  %1963 = vmatpush.msrb.mxu1 %v1877_v34  ;;  %v1876_v51 = vld [vmem:[%s4263_s7 + $0x1e0] sm:$0xff] }
 0x2ee   :  { %v1261_v5 = vpop.f32.mrf.mxu2  ;;  %v1487_v27 = vpop.f32.mrf.mxu0  ;;  %1964 = vmatpush.msrb.mxu1 %v1876_v51 }
 0x2ef   :  { %v1374_v58 = vpop.f32.mrf.mxu3  ;;  %v1262_v47 = vadd.f32 %v1261_v5, %v3450_v11  ;;  %v1488_v14 = vadd.f32 %v1487_v27, %v3479_v37  ;;  %v1604_v27 = vmax.f32 %v1149_v32, 0.0 }
 0x2f0   :  { %v1151_v42 = vpop.f32.mrf.mxu1  ;;  %v1375_v63 = vadd.f32 %v1374_v58, %v3444_v10  ;;  %1965 = vmatpush.msrb.mxu1 %v1875_v35  ;;  %v1873_v58 = vld [vmem:[%s4263_s7 + $0x1c8] sm:$0xff] }
 0x2f1   :  { %v1152_v43 = vadd.f32 %v1151_v42, %v3440_v2  ;;  %v1605_v39 = vmax.f32 %v1262_v47, 0.0  ;;  %v1607_v19 = vmax.f32 %v1488_v14, 0.0  ;;  %v1665_v42 = vrot.slane %v3802_v48, 2 }
 0x2f2   :  { %1966 = vmatpush.msrb.mxu1 %v1874_v59  ;;  %v1606_v29 = vmax.f32 %v1375_v63, 0.0  ;;  %v1736_v30 = vmax.f32 %v3696_v16, %v1604_v27  ;;  %v1869_v27 = vld [vmem:[%s4263_s7 + $0x1a8] sm:$0xff] }
 0x2f3   :  { %v1608_v26 = vmax.f32 %v1152_v43, 0.0  ;;  %v1757_v44 = vmax.f32 %v3710_v13, %v1605_v39  ;;  %v1799_v34 = vmax.f32 %v3712_v50, %v1607_v19  ;;  %v1870_v50 = vld [vmem:[%s4263_s7 + $0x1b0] sm:$0xff] }
 0x2f4   :  { %1967 = vmatpush.msrb.mxu1 %v1873_v58  ;;  %v1778_v35 = vmax.f32 %v3714_v18, %v1606_v29 }
 0x2f6   :  { %v1264_v46 = vpop.f32.mrf.mxu2  ;;  %v1490_v20 = vpop.f32.mrf.mxu0 }
 0x2f7   :  { %v1377_v21 = vpop.f32.mrf.mxu3  ;;  %v1265_v3 = vadd.f32 %v1264_v46, %v3450_v11  ;;  %v1491_v9 = vadd.f32 %v1490_v20, %v3479_v37  ;;  %v3823_v46 = vmax.f32 %v3642_v25, %v1705_v55  ;;  %v1872_v20 = vld [vmem:[%s4263_s7 + $0x1c0] sm:$0xff] }
 0x2f8   :  { %v1154_v49 = vpop.f32.mrf.mxu1  ;;  %v1378_v61 = vadd.f32 %v1377_v21, %v3444_v10  ;;  %1968 = vmatpush.msrb.mxu1 %v1872_v20 }
 0x2f9   :  { %v1155_v38 = vadd.f32 %v1154_v49, %v3440_v2  ;;  %v1609_v49 = vmax.f32 %v1265_v3, 0.0  ;;  %v1611_v25 = vmax.f32 %v1491_v9, 0.0 }
 0x2fa   :  { %v1610_v56 = vmax.f32 %v1378_v61, 0.0 }
 0x2fb   :  { %v1612_v60 = vmax.f32 %v1155_v38, 0.0  ;;  %v1758_v55 = vmax.f32 %v1757_v44, %v1609_v49  ;;  %v1800_v43 = vmax.f32 %v1799_v34, %v1611_v25 }
 0x2fe   :  { %v3725_v8 = vpop.f32.mrf.mxu2  ;;  %v3727_v54 = vpop.f32.mrf.mxu0 }
 0x2ff   :  { %v3729_v28 = vpop.f32.mrf.mxu3  ;;  %v1268_v21 = vadd.f32 %v3725_v8, %v3450_v11  ;;  %v1494_v7 = vadd.f32 %v3727_v54, %v3479_v37  ;;  %v1871_v8 = vld [vmem:[%s4263_s7 + $0x1b8] sm:$0xff] }
 0x300   :  { %v3731_v45 = vpop.f32.mrf.mxu1  ;;  %v1381_v51 = vadd.f32 %v3729_v28, %v3444_v10  ;;  %1969 = vmatpush.msrb.mxu1 %v1871_v8  ;;  %v1737_v28 = vmax.f32 %v1736_v30, %v1608_v26  ;;  %v1867_v30 = vld [vmem:[%s4263_s7 + $0x198] sm:$0xff] }
 0x301   :  { %v1613_v54 = vmax.f32 %v1268_v21, 0.0  ;;  %v1158_v47 = vadd.f32 %v3731_v45, %v3440_v2  ;;  %v1779_v45 = vmax.f32 %v1778_v35, %v1610_v56  ;;  %v1615_v3 = vmax.f32 %v1494_v7, 0.0 }
 0x302   :  { %1970 = vmatpush.msrb.mxu1 %v1870_v50  ;;  %v1738_v61 = vmax.f32 %v1737_v28, %v1612_v60  ;;  %v1614_v9 = vmax.f32 %v1381_v51, 0.0  ;;  %v1866_v51 = vld [vmem:[%s4263_s7 + $0x190] sm:$0xff]  ;;  %v1848_v28 = vld [vmem:[%s4263_s7 + $0x100] sm:$0xff] }
 0x303   :  { %v1759_v58 = vmax.f32 %v1758_v55, %v1613_v54  ;;  %v1616_v39 = vmax.f32 %v1158_v47, 0.0  ;;  %1956 = vmatpush.msra.mxu3 %v1848_v28 }
 0x304   :  { %1971 = vmatpush.msrb.mxu1 %v1869_v27  ;;  %v1780_v56 = vmax.f32 %v1779_v45, %v1614_v9  ;;  %v1865_v45 = vld [vmem:[%s4263_s7 + $0x188] sm:$0xff] }
 0x305   :  { %v1739_v44 = vmax.f32 %v1738_v61, %v1616_v39 }
 0x306   :  { %v3742_v12 = vpop.f32.mrf.mxu2  ;;  %v3744_v52 = vpop.f32.mrf.mxu0 }
 0x307   :  { %v3746_v41 = vpop.f32.mrf.mxu3  ;;  %v1271_v14 = vadd.f32 %v3742_v12, %v3450_v11  ;;  %v1497_v18 = vadd.f32 %v3744_v52, %v3479_v37 }
 0x308   :  { %v3748_v62 = vpop.f32.mrf.mxu1  ;;  %v1384_v63 = vadd.f32 %v3746_v41, %v3444_v10 }
 0x309   :  { %v1161_v12 = vadd.f32 %v3748_v62, %v3440_v2  ;;  %v1617_v19 = vmax.f32 %v1271_v14, 0.0  ;;  %v1868_v62 = vld [vmem:[%s4263_s7 + $0x1a0] sm:$0xff]  ;;  %v1619_v21 = vmax.f32 %v1497_v18, 0.0 }
 0x30a   :  { %v1618_v29 = vmax.f32 %v1384_v63, 0.0  ;;  %1972 = vmatpush.msrb.mxu1 %v1868_v62 }
 0x30b   :  { %v1620_v26 = vmax.f32 %v1161_v12, 0.0  ;;  %v1760_v34 = vmax.f32 %v1759_v58, %v1617_v19 }
 0x30c   :  { %1973 = vmatpush.msrb.mxu1 %v1867_v30  ;;  %v1781_v35 = vmax.f32 %v1780_v56, %v1618_v29 }
 0x30e   :  { %v3750_v57 = vpop.f32.mrf.mxu2  ;;  %v3752_v36 = vpop.f32.mrf.mxu0  ;;  %1974 = vmatpush.msrb.mxu1 %v1866_v51 }
 0x30f   :  { %v3754_v53 = vpop.f32.mrf.mxu3  ;;  %v1274_v41 = vadd.f32 %v3750_v57, %v3450_v11  ;;  %v1500_v52 = vadd.f32 %v3752_v36, %v3479_v37  ;;  %v1801_v36 = vmax.f32 %v1800_v43, %v1615_v3 }
 0x310   :  { %v3756_v31 = vpop.f32.mrf.mxu1  ;;  %v1387_v20 = vadd.f32 %v3754_v53, %v3444_v10  ;;  %1975 = vmatpush.msrb.mxu1 %v1865_v45 }
 0x311   :  { %v1164_v38 = vadd.f32 %v3756_v31, %v3440_v2  ;;  %v1621_v25 = vmax.f32 %v1274_v41, 0.0  ;;  %v1623_v7 = vmax.f32 %v1500_v52, 0.0  ;;  %v1802_v54 = vmax.f32 %v1801_v36, %v1619_v21  ;;  %v1864_v52 = vld [vmem:[%s4263_s7 + $0x180] sm:$0xff] }
 0x312   :  { %v1622_v47 = vmax.f32 %v1387_v20, 0.0  ;;  %1976 = vmatpush.msrb.mxu1 %v1864_v52 }
 0x313   :  { %v1624_v60 = vmax.f32 %v1164_v38, 0.0  ;;  %v1761_v43 = vmax.f32 %v1760_v34, %v1621_v25  ;;  %v1803_v3 = vmax.f32 %v1802_v54, %v1623_v7  ;;  %v1996_v38 = vld [vmem:[%s4265_s9 + $0x70] sm:$0xff] }
 0x314   :  { %v1782_v58 = vmax.f32 %v1781_v35, %v1622_v47 }
 0x316   :  { %v3773_v33 = vpop.f32.mrf.mxu2  ;;  %v3775_v40 = vpop.f32.mrf.mxu0 }
 0x317   :  { %v3777_v24 = vpop.f32.mrf.mxu3  ;;  %v1277_v57 = vadd.f32 %v3773_v33, %v3450_v11  ;;  %v1503_v49 = vadd.f32 %v3775_v40, %v3479_v37 }
 0x318   :  { %v3782_v15 = vpop.f32.mrf.mxu1  ;;  %v1390_v53 = vadd.f32 %v3777_v24, %v3444_v10  ;;  %v1832_v24 = vld [vmem:[%s4263_s7 + $0x80] sm:$0xff] }
 0x319   :  { %v1167_v31 = vadd.f32 %v3782_v15, %v3440_v2  ;;  %v1625_v14 = vmax.f32 %v1277_v57, 0.0  ;;  %v1627_v55 = vmax.f32 %v1503_v49, 0.0  ;;  %1936 = vmatpush.msra.mxu2 %v1832_v24 }
 0x31a   :  { %v1626_v12 = vmax.f32 %v1390_v53, 0.0 }
 0x31b   :  { %v1628_v63 = vmax.f32 %v1167_v31, 0.0  ;;  %v1762_v39 = vmax.f32 %v1761_v43, %v1625_v14  ;;  %v1804_v62 = vmax.f32 %v1803_v3, %v1627_v55  ;;  %v1995_v31 = vld [vmem:[%s4265_s9 + $0x68] sm:$0xff]  ;;  %v1685_v3 = vmax.f32 %v3655_v17, %v1684_v0 }
 0x31e   :  { %v3797_v22 = vpop.f32.mrf.mxu2  ;;  %v3799_v23 = vpop.f32.mrf.mxu0 }
 0x31f   :  { %v3806_v1 = vpop.f32.mrf.mxu3  ;;  %v1280_v27 = vadd.f32 %v3797_v22, %v3450_v11  ;;  %v1506_v9 = vadd.f32 %v3799_v23, %v3479_v37  ;;  %v1997_v23 = vld [vmem:[%s4265_s9 + $0x78] sm:$0xff] }
 0x320   :  { %v3813_v5 = vpop.f32.mrf.mxu1  ;;  %v1393_v19 = vadd.f32 %v3806_v1, %v3444_v10  ;;  %2002 = vmatpush.msrb.mxu2 %v1997_v23  ;;  %v1783_v1 = vmax.f32 %v1782_v58, %v1626_v12 }
 0x321   :  { %v1170_v40 = vadd.f32 %v3813_v5, %v3440_v2  ;;  %v1740_v5 = vmax.f32 %v1739_v44, %v1620_v26  ;;  %v1629_v57 = vmax.f32 %v1280_v27, 0.0  ;;  %v1631_v30 = vmax.f32 %v1506_v9, 0.0 }
 0x322   :  { %2003 = vmatpush.msrb.mxu2 %v1996_v38  ;;  %v1630_v53 = vmax.f32 %v1393_v19, 0.0  ;;  %v1727_v9 = vmax.f32 %v3659_v4, %v1726_v6  ;;  %v1991_v19 = vld [vmem:[%s4265_s9 + $0x48] sm:$0xff]  ;;  %v1666_v4 = vmax.f32 %v3802_v48, %v1665_v42  ;;  %v1989_v48 = vld [vmem:[%s4265_s9 + $0x38] sm:$0xff] }
 0x323   :  { %v1741_v61 = vmax.f32 %v1740_v5, %v1624_v60  ;;  %v1632_v41 = vmax.f32 %v1170_v40, 0.0  ;;  %v1994_v60 = vld [vmem:[%s4265_s9 + $0x60] sm:$0xff]  ;;  %v1763_v54 = vmax.f32 %v1762_v39, %v1629_v57  ;;  %v1805_v24 = vmax.f32 %v1804_v62, %v1631_v30 }
 0x324   :  { %2004 = vmatpush.msrb.mxu2 %v1995_v31  ;;  %v1728_v42 = vrot.slane %v1727_v9, 2  ;;  %v1707_v31 = vrot.slane %v3823_v46, 2 }
 0x325   :  { %v1742_v29 = vmax.f32 %v1741_v61, %v1628_v63  ;;  %v1784_v63 = vmax.f32 %v1783_v1, %v1630_v53 }
 0x326   :  { %v3842_v32 = vpop.f32.mrf.mxu2  ;;  %v3844_v16 = vpop.f32.mrf.mxu0  ;;  %2005 = vmatpush.msrb.mxu2 %v1994_v60 }
 0x327   :  { %v3851_v13 = vpop.f32.mrf.mxu3  ;;  %v1283_v22 = vadd.f32 %v3842_v32, %v3450_v11  ;;  %v1509_v21 = vadd.f32 %v3844_v16, %v3479_v37  ;;  %v1743_v56 = vmax.f32 %v1742_v29, %v1632_v41 }
 0x328   :  { %v1172_v59 = vpop.f32.mrf.mxu1  ;;  %v1396_v32 = vadd.f32 %v3851_v13, %v3444_v10 }
 0x329   :  { %v1173_v18 = vadd.f32 %v1172_v59, %v3440_v2  ;;  %v1633_v44 = vmax.f32 %v1283_v22, 0.0  ;;  %v1635_v40 = vmax.f32 %v1509_v21, 0.0  ;;  %v1990_v21 = vld [vmem:[%s4265_s9 + $0x40] sm:$0xff] }
 0x32a   :  { %v1634_v47 = vmax.f32 %v1396_v32, 0.0  ;;  %v1686_v32 = vrot.slane %v1685_v3, 2 }
 0x32b   :  { %v1636_v20 = vmax.f32 %v1173_v18, 0.0  ;;  %v1764_v18 = vmax.f32 %v1763_v54, %v1633_v44  ;;  %v1806_v12 = vmax.f32 %v1805_v24, %v1635_v40  ;;  %v1986_v54 = vld [vmem:[%s4265_s9 + $0x20] sm:$0xff] }
 0x32c   :  { %v1785_v41 = vmax.f32 %v1784_v63, %v1634_v47  ;;  %v1687_v44 = vmax.f32 %v1685_v3, %v1686_v32  ;;  %v2126_v3 = vld [vmem:[%s4269_s13 + $0x158] sm:$0xff]  ;;  %v2121_v32 = vld [vmem:[%s4269_s13 + $0x130] sm:$0xff] }
 0x32d   :  { %v1744_v51 = vmax.f32 %v1743_v56, %v1636_v20  ;;  %v1988_v56 = vld [vmem:[%s4265_s9 + $0x30] sm:$0xff] }
 0x32e   :  { %v1285_v33 = vpop.f32.mrf.mxu2  ;;  %v1511_v8 = vpop.f32.mrf.mxu0  ;;  %v1688_v24 = vrot.slane %v1687_v44, 1 }
 0x32f   :  { %v1398_v15 = vpop.f32.mrf.mxu3  ;;  %v1286_v36 = vadd.f32 %v1285_v33, %v3450_v11  ;;  %v1512_v16 = vadd.f32 %v1511_v8, %v3479_v37 }
 0x330   :  { %v1175_v50 = vpop.f32.mrf.mxu1  ;;  %v1399_v13 = vadd.f32 %v1398_v15, %v3444_v10  ;;  %v1993_v15 = vld [vmem:[%s4265_s9 + $0x58] sm:$0xff] }
 0x331   :  { %v1176_v59 = vadd.f32 %v1175_v50, %v3440_v2  ;;  %v1637_v14 = vmax.f32 %v1286_v36, 0.0  ;;  %v1639_v28 = vmax.f32 %v1512_v16, 0.0  ;;  %2006 = vmatpush.msrb.mxu2 %v1993_v15  ;;  %v1667_v16 = vrot.slane %v1666_v4, 1 }
 0x332   :  { %v1638_v45 = vmax.f32 %v1399_v13, 0.0 }
 0x333   :  { %v1640_v25 = vmax.f32 %v1176_v59, 0.0  ;;  %v1765_v59 = vmax.f32 %v1764_v18, %v1637_v14  ;;  %v1807_v22 = vmax.f32 %v1806_v12, %v1639_v28  ;;  %v1668_v47 = vmax.f32 %v1666_v4, %v1667_v16  ;;  %v1984_v12 = vld [vmem:[%s4265_s9 + $0x10] sm:$0xff]  ;;  %v1982_v4 = vld [vmem:[%s4265_s9] sm:$0xff]  ;;  %v2090_v16 = vld [vmem:[%s4269_s13 + $0x38] sm:$0xff] }
 0x334   :  { %v1786_v6 = vmax.f32 %v1785_v41, %v1638_v45 }
 0x335   :  { %v1745_v5 = vmax.f32 %v1744_v51, %v1640_v25 }
 0x336   :  { %v1288_v26 = vpop.f32.mrf.mxu2  ;;  %v1514_v49 = vpop.f32.mrf.mxu0 }
 0x337   :  { %v1401_v7 = vpop.f32.mrf.mxu3  ;;  %v1289_v33 = vadd.f32 %v1288_v26, %v3450_v11  ;;  %v1515_v35 = vadd.f32 %v1514_v49, %v3479_v37 }
 0x338   :  { %v1178_v34 = vpop.f32.mrf.mxu1  ;;  %v1402_v50 = vadd.f32 %v1401_v7, %v3444_v10 }
 0x339   :  { %v1179_v8 = vadd.f32 %v1178_v34, %v3440_v2  ;;  %v1641_v43 = vmax.f32 %v1289_v33, 0.0  ;;  %v1992_v2 = vld [vmem:[%s4265_s9 + $0x50] sm:$0xff]  ;;  %v1643_v27 = vmax.f32 %v1515_v35, 0.0  ;;  %v1987_v33 = vld [vmem:[%s4265_s9 + $0x28] sm:$0xff]  ;;  %v1729_v34 = vmax.f32 %v1727_v9, %v1728_v42  ;;  %v2115_v42 = vld [vmem:[%s4269_s13 + $0x100] sm:$0xff] }
 0x33a   :  { %v1642_v52 = vmax.f32 %v1402_v50, 0.0  ;;  %2007 = vmatpush.msrb.mxu2 %v1992_v2  ;;  %v1708_v35 = vmax.f32 %v3823_v46, %v1707_v31  ;;  %v1985_v46 = vld [vmem:[%s4265_s9 + $0x18] sm:$0xff]  ;;  %v1689_v9 = vmax.f32 %v1687_v44, %v1688_v24  ;;  %v2109_v31 = vld [vmem:[%s4269_s13 + $0xd0] sm:$0xff]  ;;  %v2084_v44 = vld [vmem:[%s4269_s13 + $0x8] sm:$0xff] }
 0x33b   :  { %v1644_v55 = vmax.f32 %v1179_v8, 0.0  ;;  %v1766_v62 = vmax.f32 %v1765_v59, %v1641_v43  ;;  %v1808_v20 = vmax.f32 %v1807_v22, %v1643_v27  ;;  %v2123_v59 = vld [vmem:[%s4269_s13 + $0x140] sm:$0xff] }
 0x33c   :  { %2008 = vmatpush.msrb.mxu2 %v1991_v19  ;;  %v1709_v43 = vrot.slane %v1708_v35, 1 }
 0x33d   :  { %v1746_v61 = vmax.f32 %v1745_v5, %v1644_v55  ;;  %v2129_v5 = vld [vmem:[%s4269_s13 + $0x170] sm:$0xff]  ;;  %v1730_v55 = vrot.slane %v1729_v34, 1 }
 0x33e   :  { %v1291_v58 = vpop.f32.mrf.mxu2  ;;  %v1517_v39 = vpop.f32.mrf.mxu0  ;;  %2009 = vmatpush.msrb.mxu2 %v1990_v21  ;;  %v1710_v22 = vmax.f32 %v1708_v35, %v1709_v43  ;;  %v2114_v21 = vld [vmem:[%s4269_s13 + $0xf8] sm:$0xff] }
 0x33f   :  { %v1747_v23 = vrot.slane %v1746_v61, 4  ;;  %v1292_v17 = vadd.f32 %v1291_v58, %v3450_v11  ;;  %v1404_v0 = vpop.f32.mrf.mxu3  ;;  %v1518_v38 = vadd.f32 %v1517_v39, %v3479_v37  ;;  %v1787_v37 = vmax.f32 %v1786_v6, %v1642_v52  ;;  %v1983_v52 = vld [vmem:[%s4265_s9 + $0x8] sm:$0xff]  ;;  %v2122_v43 = vld [vmem:[%s4269_s13 + $0x138] sm:$0xff] }
 0x340   :  { %v1405_v29 = vadd.f32 %v1404_v0, %v3444_v10  ;;  %2010 = vmatpush.msrb.mxu2 %v1989_v48  ;;  %v1731_v58 = vmax.f32 %v1729_v34, %v1730_v55  ;;  %v2102_v48 = vld [vmem:[%s4269_s13 + $0x98] sm:$0xff]  ;;  %v2091_v34 = vld [vmem:[%s4269_s13 + $0x40] sm:$0xff]  ;;  %v2052_v55 = vld [vmem:[%s4267_s11 + $0x8] sm:$0xff] }
 0x341   :  { %v1748_v1 = vmax.f32 %v1746_v61, %v1747_v23  ;;  %v1645_v57 = vmax.f32 %v1292_v17, 0.0  ;;  %v1647_v11 = vmax.f32 %v1518_v38, 0.0  ;;  %v2120_v17 = vld [vmem:[%s4269_s13 + $0x128] sm:$0xff] }
 0x342   :  { %v1646_v36 = vmax.f32 %v1405_v29, 0.0  ;;  %2011 = vmatpush.msrb.mxu2 %v1988_v56  ;;  %v2130_v29 = vld [vmem:[%s4269_s13 + $0x178] sm:$0xff] }
 0x343   :  { %v1749_v26 = vrot.slane %v1748_v1, 2  ;;  %v1767_v49 = vmax.f32 %v1766_v62, %v1645_v57  ;;  %v1809_v10 = vmax.f32 %v1808_v20, %v1647_v11  ;;  %v2117_v62 = vld [vmem:[%s4269_s13 + $0x110] sm:$0xff]  ;;  %v2127_v20 = vld [vmem:[%s4269_s13 + $0x160] sm:$0xff]  ;;  %v2124_v57 = vld [vmem:[%s4269_s13 + $0x148] sm:$0xff] }
 0x344   :  { %v1788_v30 = vmax.f32 %v1787_v37, %v1646_v36  ;;  %2012 = vmatpush.msrb.mxu2 %v1987_v33  ;;  %v2108_v11 = vld [vmem:[%s4269_s13 + $0xc8] sm:$0xff]  ;;  %v2105_v37 = vld [vmem:[%s4269_s13 + $0xb0] sm:$0xff]  ;;  %v2118_v36 = vld [vmem:[%s4269_s13 + $0x118] sm:$0xff] }
 0x345   :  { %v1750_v25 = vmax.f32 %v1748_v1, %v1749_v26  ;;  %v1768_v7 = vrot.slane %v1767_v49, 4  ;;  %v1810_v53 = vrot.slane %v1809_v10, 4  ;;  %v2111_v1 = vld [vmem:[%s4269_s13 + $0xe0] sm:$0xff]  ;;  %v2106_v56 = vld [vmem:[%s4269_s13 + $0xb8] sm:$0xff] }
 0x346   :  { %v1789_v13 = vrot.slane %v1788_v30, 4  ;;  %2013 = vmatpush.msrb.mxu2 %v1986_v54  ;;  %v2099_v26 = vld [vmem:[%s4269_s13 + $0x80] sm:$0xff]  ;;  %v2094_v33 = vld [vmem:[%s4269_s13 + $0x58] sm:$0xff] }
 0x347   :  { %v1751_v60 = vrot.slane %v1750_v25, 1  ;;  %v1769_v40 = vmax.f32 %v1767_v49, %v1768_v7  ;;  %v1811_v51 = vmax.f32 %v1809_v10, %v1810_v53  ;;  %v2112_v49 = vld [vmem:[%s4269_s13 + $0xe8] sm:$0xff]  ;;  %v2087_v7 = vld [vmem:[%s4269_s13 + $0x20] sm:$0xff] }
 0x348   :  { %v1790_v8 = vmax.f32 %v1788_v30, %v1789_v13  ;;  %2014 = vmatpush.msrb.mxu2 %v1985_v46  ;;  %v2096_v10 = vld [vmem:[%s4269_s13 + $0x68] sm:$0xff]  ;;  %v2093_v30 = vld [vmem:[%s4269_s13 + $0x50] sm:$0xff] }
 0x349   :  { %v1752_v14 = vmax.f32 %v1750_v25, %v1751_v60  ;;  %v1770_v50 = vrot.slane %v1769_v40, 2  ;;  %v1812_v15 = vrot.slane %v1811_v51, 2  ;;  %v2103_v25 = vld [vmem:[%s4269_s13 + $0xa0] sm:$0xff]  ;;  %v2100_v53 = vld [vmem:[%s4269_s13 + $0x88] sm:$0xff]  ;;  %v2097_v13 = vld [vmem:[%s4269_s13 + $0x70] sm:$0xff] }
 0x34a   :  { %v1791_v28 = vrot.slane %v1790_v8, 2  ;;  %2015 = vmatpush.msrb.mxu2 %v1984_v12  ;;  %v2088_v60 = vld [vmem:[%s4269_s13 + $0x28] sm:$0xff]  ;;  %v2053_v46 = vld [vmem:[%s4267_s11 + $0x10] sm:$0xff] }
 0x34b   :  { %v1771_v63 = vmax.f32 %v1769_v40, %v1770_v50  ;;  %v1813_v18 = vmax.f32 %v1811_v51, %v1812_v15  ;;  %v1893_v45 = vsel %vm1892_vm1, %v1752_v14, %v1668_v47  ;;  %v2085_v40 = vld [vmem:[%s4269_s13 + $0x10] sm:$0xff]  ;;  %v2040_v51 = vld [vmem:[%s4272_s16] sm:$0x3]  ;;  %v2116_v12 = vld [vmem:[%s4269_s13 + $0x108] sm:$0xff] }
 0x34c   :  { %v1792_v2 = vmax.f32 %v1790_v8, %v1791_v28  ;;  %1917 = vmatmul.f32.vlgmr.msra.gmra.mxu1 %v1893_v45  ;;  %2016 = vmatpush.msrb.mxu2 %v1983_v52  ;;  %v2467_v8 = vld [vmem:[%s4264_s8] ss:$0 sm:$0xff]  ;;  %v2125_v45 = vld [vmem:[%s4269_s13 + $0x150] sm:$0xff] }
 0x34d   :  { %v1772_v27 = vrot.slane %v1771_v63, 1  ;;  %v1814_v61 = vrot.slane %v1813_v18, 1  ;;  %2151 = vmatpush.msra.mxu1 %v2129_v5  ;;  %2042 = vrot.lane.b32.xlu1 %v2040_v51, %s2509_s22  ;;  %v2054_v5 = vld [vmem:[%s4267_s11 + $0x18] sm:$0xff]  ;;  %v2207_v51 = vld [vmem:[%s4270_s14 + $0x30] sm:$0xff]  ;;  %s2324_s22 = sshll.u32 %s4275_s19, 4  ;;  %s2325_s22 = int_to_ptr.hbm [resolvable:$true] %s2324_s22 }
 0x34e   :  { %v1793_v41 = vrot.slane %v1792_v2, 1  ;;  %2017 = vmatpush.msrb.mxu2 %v1982_v4  ;;  %2074 = vmatpush.msrb.mxu3 %v2054_v5  ;;  %v2098_v4 = vld [vmem:[%s4269_s13 + $0x78] sm:$0xff] }
 0x34f   :  { %v1773_v39 = vmax.f32 %v1771_v63, %v1772_v27  ;;  %v1815_v19 = vmax.f32 %v1813_v18, %v1814_v61  ;;  %2152 = vmatpush.msra.mxu1 %v2126_v3  ;;  %v2051_v63 = vld [vmem:[%s4267_s11] sm:$0xff]  ;;  %v2128_v18 = vld [vmem:[%s4269_s13 + $0x168] sm:$0xff]  ;;  %v2113_v27 = vld [vmem:[%s4269_s13 + $0xf0] sm:$0xff] }
 0x350   :  { %v1794_v23 = vmax.f32 %v1792_v2, %v1793_v41  ;;  %2075 = vmatpush.msrb.mxu3 %v2053_v46  ;;  %v2119_v2 = vld [vmem:[%s4269_s13 + $0x120] sm:$0xff]  ;;  %v2110_v41 = vld [vmem:[%s4269_s13 + $0xd8] sm:$0xff] }
 0x351   :  { %v1894_v0 = vsel %vm1892_vm1, %v1773_v39, %v1689_v9  ;;  %v1896_v38 = vsel %vm1892_vm1, %v1815_v19, %v1731_v58  ;;  %2153 = vmatpush.msra.mxu1 %v2123_v59  ;;  %v2468_v3 = vld [vmem:[%s4266_s10] ss:$0 sm:$0xff]  ;;  %v2208_v5 = vld [vmem:[%s4270_s14 + $0x38] sm:$0xff] }
 0x352   :  { %1937 = vmatmul.f32.vlgmr.msra.gmra.mxu2 %v1894_v0  ;;  %v1895_v6 = vsel %vm1892_vm1, %v1794_v23, %v1710_v22  ;;  %2076 = vmatpush.msrb.mxu3 %v2052_v55  ;;  %v2107_v58 = vld [vmem:[%s4269_s13 + $0xc0] sm:$0xff]  ;;  %v2104_v23 = vld [vmem:[%s4269_s13 + $0xa8] sm:$0xff] }
 0x353   :  { %1957 = vmatmul.f32.vlgmr.msra.gmra.mxu3 %v1895_v6  ;;  %2154 = vmatpush.msra.mxu1 %v2120_v17  ;;  %v2205_v46 = vld [vmem:[%s4270_s14 + $0x20] sm:$0xff]  ;;  %v2202_v55 = vld [vmem:[%s4270_s14 + $0x8] sm:$0xff] }
 0x354   :  { %1977 = vmatmul.f32.vlgmr.msrb.gmra.mxu1 %v1896_v38  ;;  %2171 = vmatpush.msra.mxu2 %v2130_v29  ;;  %v2101_v38 = vld [vmem:[%s4269_s13 + $0x90] sm:$0xff] }
 0x355   :  { %2155 = vmatpush.msra.mxu1 %v2117_v62  ;;  %2077 = vmatpush.msrb.mxu3 %v2051_v63  ;;  %v2469_v63 = vld [vmem:[%s4268_s12] ss:$0 sm:$0xff]  ;;  %s2511_s12 = smov [#allocation2]  }
 0x356   :  { %2172 = vmatpush.msra.mxu2 %v2127_v20 }
 0x357   :  { %2156 = vmatpush.msra.mxu1 %v2114_v21  ;;  %2131 = vmatpush.msra.mxu3 %v2128_v18 }
 0x358   :  { %2173 = vmatpush.msra.mxu2 %v2124_v57 }
 0x359   :  { %2157 = vmatpush.msra.mxu1 %v2111_v1  ;;  %2132 = vmatpush.msra.mxu3 %v2125_v45 }
 0x35a   :  { %2174 = vmatpush.msra.mxu2 %v2121_v32 }
 0x35b   :  { %2158 = vmatpush.msra.mxu1 %v2108_v11  ;;  %2133 = vmatpush.msra.mxu3 %v2122_v43 }
 0x35c   :  { %2175 = vmatpush.msra.mxu2 %v2118_v36 }
 0x35d   :  { %2159 = vmatpush.msra.mxu1 %v2105_v37  ;;  %2134 = vmatpush.msra.mxu3 %v2119_v2 }
 0x35e   :  { %2176 = vmatpush.msra.mxu2 %v2115_v42  ;;  %v2092_v42 = vld [vmem:[%s4269_s13 + $0x48] sm:$0xff] }
 0x35f   :  { %2160 = vmatpush.msra.mxu1 %v2102_v48  ;;  %2135 = vmatpush.msra.mxu3 %v2116_v12  ;;  %v2095_v48 = vld [vmem:[%s4269_s13 + $0x60] sm:$0xff] }
 0x360   :  { %2177 = vmatpush.msra.mxu2 %v2112_v49  ;;  %v2086_v49 = vld [vmem:[%s4269_s13 + $0x18] sm:$0xff] }
 0x361   :  { %2161 = vmatpush.msra.mxu1 %v2099_v26  ;;  %2136 = vmatpush.msra.mxu3 %v2113_v27  ;;  %v2089_v26 = vld [vmem:[%s4269_s13 + $0x30] sm:$0xff] }
 0x362   :  { %2178 = vmatpush.msra.mxu2 %v2109_v31  ;;  %v2224_v31 = vld [vmem:[%s4270_s14 + $0xb8] sm:$0x7f] }
 0x363   :  { %2162 = vmatpush.msra.mxu1 %v2096_v10  ;;  %2137 = vmatpush.msra.mxu3 %v2110_v41  ;;  %v2083_v10 = vld [vmem:[%s4269_s13] sm:$0xff] }
 0x364   :  { %2179 = vmatpush.msra.mxu2 %v2106_v56  ;;  %v2218_v56 = vld [vmem:[%s4270_s14 + $0x88] sm:$0xff] }
 0x365   :  { %2163 = vmatpush.msra.mxu1 %v2093_v30  ;;  %2138 = vmatpush.msra.mxu3 %v2107_v58  ;;  %v2221_v30 = vld [vmem:[%s4270_s14 + $0xa0] sm:$0xff] }
 0x366   :  { %2180 = vmatpush.msra.mxu2 %v2103_v25  ;;  %v2212_v25 = vld [vmem:[%s4270_s14 + $0x58] sm:$0xff] }
 0x367   :  { %2164 = vmatpush.msra.mxu1 %v2090_v16  ;;  %2139 = vmatpush.msra.mxu3 %v2104_v23  ;;  %v2215_v16 = vld [vmem:[%s4270_s14 + $0x70] sm:$0xff] }
 0x368   :  { %2181 = vmatpush.msra.mxu2 %v2100_v53 }
 0x369   :  { %2165 = vmatpush.msra.mxu1 %v2087_v7  ;;  %2140 = vmatpush.msra.mxu3 %v2101_v38  ;;  %v2209_v7 = vld [vmem:[%s4270_s14 + $0x40] sm:$0xff] }
 0x36a   :  { %2182 = vmatpush.msra.mxu2 %v2097_v13  ;;  %v2222_v13 = vld [vmem:[%s4270_s14 + $0xa8] sm:$0x7f] }
 0x36b   :  { %2166 = vmatpush.msra.mxu1 %v2084_v44  ;;  %2141 = vmatpush.msra.mxu3 %v2098_v4 }
 0x36c   :  { %2183 = vmatpush.msra.mxu2 %v2094_v33  ;;  %v2219_v33 = vld [vmem:[%s4270_s14 + $0x90] sm:$0xff] }
 0x36d   :  { %2142 = vmatpush.msra.mxu3 %v2095_v48  ;;  %2374 = vmatpush.msk.msrb.mxu1 %vm2229_vm3, %v2224_v31 }
 0x36e   :  { %2184 = vmatpush.msra.mxu2 %v2091_v34  ;;  %v2216_v34 = vld [vmem:[%s4270_s14 + $0x78] sm:$0xff] }
 0x36f   :  { %2143 = vmatpush.msra.mxu3 %v2092_v42  ;;  %2288 = vmatpush.msrb.mxu1 %v2221_v30 }
 0x370   :  { %2185 = vmatpush.msra.mxu2 %v2088_v60  ;;  %v2213_v60 = vld [vmem:[%s4270_s14 + $0x60] sm:$0xff] }
 0x371   :  { %2144 = vmatpush.msra.mxu3 %v2089_v26  ;;  %2289 = vmatpush.msrb.mxu1 %v2218_v56 }
 0x372   :  { %2186 = vmatpush.msra.mxu2 %v2085_v40  ;;  %v2210_v40 = vld [vmem:[%s4270_s14 + $0x48] sm:$0xff] }
 0x373   :  { %2145 = vmatpush.msra.mxu3 %v2086_v49  ;;  %2290 = vmatpush.msrb.mxu1 %v2215_v16 }
 0x375   :  { %2146 = vmatpush.msra.mxu3 %v2083_v10  ;;  %2291 = vmatpush.msrb.mxu1 %v2212_v25 }
 0x377   :  { %2292 = vmatpush.msrb.mxu1 %v2209_v7 }
 0x3bf   :  { %v2043_v6 = vpop.permute.xlu1 %2042 }
 0x3c9   :  { %v1918_v35 = vpop.f32.mrf.mxu1 }
 0x3ca   :  { %v1919_v54 = vadd.f32 %v2467_v8, %v1918_v35  ;;  %v2204_v35 = vld [vmem:[%s4270_s14 + $0x18] sm:$0xff]  ;;  %v2201_v8 = vld [vmem:[%s4270_s14] sm:$0xff] }
 0x3d1   :  { %v1978_v24 = vpop.f32.mrf.mxu1 }
 0x3d5   :  { %v1938_v47 = vpop.f32.mrf.mxu2 }
 0x3d6   :  { %v1939_v14 = vadd.f32 %v1938_v47, %v1919_v54  ;;  %v1958_v50 = vpop.f32.mrf.mxu3  ;;  %v2223_v54 = vld [vmem:[%s4270_s14 + $0xb0] sm:$0x7f]  ;;  %v2220_v47 = vld [vmem:[%s4270_s14 + $0x98] sm:$0xff] }
 0x3d8   :  { %v1959_v15 = vadd.f32 %v1958_v50, %v1939_v14  ;;  %v2217_v14 = vld [vmem:[%s4270_s14 + $0x80] sm:$0xff]  ;;  %v2206_v50 = vld [vmem:[%s4270_s14 + $0x28] sm:$0xff] }
 0x3d9   :  { %2293 = vmatpush.msrb.mxu1 %v2206_v50 }
 0x3da   :  { %v4093_v28 = vadd.f32 %v1978_v24, %v1959_v15  ;;  %v2214_v15 = vld [vmem:[%s4270_s14 + $0x68] sm:$0xff]  ;;  %v2203_v24 = vld [vmem:[%s4270_s14 + $0x10] sm:$0xff] }
 0x3db   :  { %2294 = vmatpush.msrb.mxu1 %v2203_v24 }
 0x3dc   :  { %1981 = vst [vmem:[%s4273_s17] sm:$0x3] %v4093_v28  ;;  %2018 = vmatmul.f32.vlgmr.msrb.gmra.mxu2 %v4093_v28  ;;  %2167 = vmatmul.f32.vlgmr.msra.gmra.mxu1 %v4093_v28 }
 0x3e4   :  { %2187 = vmatmul.f32.vlgmr.msra.gmra.mxu2 %v4093_v28 }
 0x459   :  { %v2168_v2 = vpop.f32.mrf.mxu1 }
 0x45f   :  { %v2019_v61 = vpop.f32.mrf.mxu2 }
 0x460   :  { %v2020_v9 = vadd.f32 %v2468_v3, %v2019_v61  ;;  %v2082_v3 = vld [vmem:[%s4271_s15] sm:$0x7] }
 0x461   :  { %v2194_v27 = vperm.slane %v2082_v3, 2  ;;  %v2193_v61 = vperm.slane %v2082_v3, 1  ;;  %v2192_v41 = vperm.slane %v2082_v3, 0 }
 0x462   :  { %v2025_v59 = vmax.f32 %v2020_v9, -18.420681  ;;  %v2022_v52 = vmul.f32 0.5, %v2020_v9 }
 0x463   :  { %v2199_v58 = vadd.f32 %v2193_v61, %v2168_v2 }
 0x464   :  { %v2026_v39 = vsub.f32 %v2020_v9, %v2025_v59  ;;  %v2029_v19 = vsub.f32 -18.420681, %v2025_v59  ;;  %v2023_v22 = vmul.f32 1.442695, %v2022_v52 }
 0x466   :  { %v2027_v17 = vmul.f32 1.442695, %v2026_v39  ;;  %v2030_v0 = vmul.f32 1.442695, %v2029_v19  ;;  %2470 = vpow2.f32 %v2023_v22 }
 0x468   :  { %2472 = vpow2.f32 %v2027_v17 }
 0x469   :  { %2474 = vpow2.f32 %v2030_v0 }
 0x46c   :  { %v2471_v62 = vpop.eup %2470 }
 0x46d   :  { %v2045_v29 = vmul.f32 %v2471_v62, %v2043_v6 }
 0x46e   :  { %v2473_v21 = vpop.eup %2472 }
 0x46f   :  { %v2475_v20 = vpop.eup %2474  ;;  %2047 = vrot.lane.b32.xlu2 %v2045_v29, %s2510_s3 }
 0x470   :  { %v2032_v1 = vadd.f32 %v2475_v20, %v2473_v21 }
 0x472   :  { %2476 = vlog2.f32 %v2032_v1 }
 0x478   :  { %v2477_v57 = vpop.eup %2476 }
 0x479   :  { %v2034_v11 = vmul.f32 0.6931472, %v2477_v57 }
 0x47b   :  { %v2035_v32 = vadd.f32 %v2034_v11, %v2025_v59 }
 0x47d   :  { %v2037_v37 = vsel %vm2036_vm2, %v2020_v9, %v2035_v32 }
 0x47e   :  { %v2038_v36 = vsel %vm752_vm0, %v2037_v37, 0.0 }
 0x47f   :  { %2039 = vst [vmem:[%s4274_s18] sm:$0x3] %v2038_v36 }
 0x4c9   :  { %v2048_v53 = vpop.permute.xlu2 %2047 }
 0x4ca   :  { %v2050_v44 = vadd.f32 %v2048_v53, %v2020_v9  ;;  %v2188_v9 = vpop.f32.mrf.mxu2 }
 0x4cb   :  { %v2200_v52 = vadd.f32 %v2194_v27, %v2188_v9 }
 0x4cc   :  { %2369 = vmatmul.msk.f32.vlgmr.msrb.gmra.mxu3 %vm2036_vm2, %v2050_v44 }
 0x4cd   :  { %2370 = vmatpush.msk.msrb.mxu3 %vm2229_vm3, %v2222_v13 }
 0x4cf   :  { %2248 = vmatpush.msrb.mxu3 %v2219_v33 }
 0x4d1   :  { %2249 = vmatpush.msrb.mxu3 %v2216_v34 }
 0x4d3   :  { %2250 = vmatpush.msrb.mxu3 %v2213_v60 }
 0x4d4   :  { %2147 = vmatmul.f32.vlgmr.msra.gmra.mxu3 %v4093_v28  ;;  %v2211_v28 = vld [vmem:[%s4270_s14 + $0x50] sm:$0xff]  ;;  %s2322_s14 = sshll.u32 %s2511_s12, 4  ;;  %s2323_s14 = int_to_ptr.vmem [resolvable:$true] %s2322_s14 }
 0x4d5   :  { %2251 = vmatpush.msrb.mxu3 %v2210_v40 }
 0x4d7   :  { %2252 = vmatpush.msrb.mxu3 %v2207_v51 }
 0x4d9   :  { %2253 = vmatpush.msrb.mxu3 %v2204_v35 }
 0x4db   :  { %2254 = vmatpush.msrb.mxu3 %v2201_v8 }
 0x4dd   :  { %2372 = vmatpush.msk.msra.mxu3 %vm2229_vm3, %v2223_v54 }
 0x4df   :  { %2268 = vmatpush.msra.mxu3 %v2220_v47 }
 0x4e1   :  { %2269 = vmatpush.msra.mxu3 %v2217_v14 }
 0x4e3   :  { %2270 = vmatpush.msra.mxu3 %v2214_v15 }
 0x4e5   :  { %2271 = vmatpush.msra.mxu3 %v2211_v28 }
 0x4e7   :  { %2272 = vmatpush.msra.mxu3 %v2208_v5 }
 0x4e9   :  { %2273 = vmatpush.msra.mxu3 %v2205_v46 }
 0x4eb   :  { %2274 = vmatpush.msra.mxu3 %v2202_v55 }
 0x54f   :  { %v2079_v18 = vpop.f32.mrf.mxu3 }
 0x550   :  { %v2080_v45 = vadd.f32 %v2469_v63, %v2079_v18 }
 0x552   :  { %2371 = vmatmul.msk.f32.vlgmr.msrb.gmra.mxu3 %vm2225_vm4, %v2080_v45  ;;  %2375 = vmatmul.msk.f32.vlgmr.msrb.gmra.mxu1 %vm2225_vm4, %v2080_v45 }
 0x557   :  { %v2148_v43 = vpop.f32.mrf.mxu3 }
 0x558   :  { %v2198_v22 = vadd.f32 %v2192_v41, %v2148_v43 }
 0x55a   :  { %2373 = vmatmul.msk.f32.vlgmr.msra.gmra.mxu3 %vm2225_vm4, %v2080_v45 }
 0x5cf   :  { %v2296_v59 = vpop.f32.mrf.mxu1 }
 0x5d0   :  { %v2301_v39 = vadd.f32 %v2296_v59, %v2200_v52 }
 0x5d2   :  { %v2306_v38 = vrot.slane %v2301_v39, 4 }
 0x5d5   :  { %v2256_v12 = vpop.f32.mrf.mxu3 }
 0x5d6   :  { %v2299_v17 = vadd.f32 %v2256_v12, %v2198_v22 }
 0x5dd   :  { %v2276_v19 = vpop.f32.mrf.mxu3 }
 0x5de   :  { %v2300_v23 = vadd.f32 %v2276_v19, %v2199_v58 }
 0x5e0   :  { %v2305_v0 = vrot.slane %v2300_v23, 6 }
 0x5e2   :  { %v2308_v4 = vsel %vm2307_vm5, %v2299_v17, %v2305_v0 }
 0x5e3   :  { %v2310_v6 = vsel %vm2309_vm6, %v2308_v4, %v2306_v38 }
 0x5e4   :  { %2312 = vst [vmem:[#allocation2] sm:$0x3f] %v2310_v6 }
 0x5e5   :  { %2327 = dma.vmem_to_hbm [thread:$0]  %s2323_s14, 96, %s2325_s22, [#allocation3]  }
 0x5e6   :  { %2504 = dma.done.wait [#allocation3], 96  }
 0x5e7   :  { %2505 = vsyncadd [#allocation3], 4294967200 }
 0x5e8   :  { %2336 = vsyncpa [#allocation3], 1 }

</bundles_post_ra>
